<compile_context>
chip_gen: v6e
topology: v6e:2x2x1
jax: 0.10.0
libtpu: 0.0.40
codegen_flags: <defaults>
</compile_context>

<pallas_src>
import numpy as np

import jax
import jax.numpy as jnp
from jax.experimental import pallas as pl
from jax.experimental.pallas import tpu as pltpu

# ----------------------------- architecture config -----------------------------
NUM_BLOCKS = [2, 1, 1, 1]            # small RepVGG (stage1's 2nd block has identity)
WIDTH_MULT = [0.25, 0.25, 0.25, 0.25]
NUM_CLASSES = 10
NCLS_PAD = 128                       # lane-dense padded class dim
BN_EPS = 1e-5


# ----------------------------- parameter init (matches the PyTorch module) -----------------------------
def _block_cfgs():
    cfgs = []
    in_planes = min(64, int(64 * WIDTH_MULT[0]))
    cfgs.append((3, in_planes, 2))                       # stage0
    planes_list = [int(64 * WIDTH_MULT[0]), int(128 * WIDTH_MULT[1]),
                   int(256 * WIDTH_MULT[2]), int(512 * WIDTH_MULT[3])]
    for planes, nb in zip(planes_list, NUM_BLOCKS):
        strides = [2] + [1] * (nb - 1)
        for s in strides:
            cfgs.append((in_planes, planes, s))
            in_planes = planes
    return cfgs, in_planes


def _init_bn(key, c):
    k1, k2, k3, k4 = jax.random.split(key, 4)
    gamma = 1.0 + 0.1 * jax.random.normal(k1, (c,), jnp.float32)
    beta = 0.1 * jax.random.normal(k2, (c,), jnp.float32)
    mean = 0.1 * jax.random.normal(k3, (c,), jnp.float32)
    var = jax.random.uniform(k4, (c,), jnp.float32, 0.5, 1.5)
    return (gamma, beta, mean, var)


def init_params(key):
    cfgs, final_c = _block_cfgs()
    blocks = []
    for (cin, cout, stride) in cfgs:
        key, k3, kb3, k1, kb1, kid = jax.random.split(key, 6)
        p = {
            "w3": 0.1 * jax.random.normal(k3, (cout, cin, 3, 3), jnp.float32),
            "bn3": _init_bn(kb3, cout),
            "w1": 0.1 * jax.random.normal(k1, (cout, cin, 1, 1), jnp.float32),
            "bn1": _init_bn(kb1, cout),
            "stride": stride,
            "has_id": (cin == cout and stride == 1),
        }
        if p["has_id"]:
            p["bnid"] = _init_bn(kid, cin)
        blocks.append(p)
    key, kw, kb = jax.random.split(key, 3)
    return {
        "blocks": blocks,
        "linear_w": 0.05 * jax.random.normal(kw, (NUM_CLASSES, final_c), jnp.float32),
        "linear_b": 0.05 * jax.random.normal(kb, (NUM_CLASSES,), jnp.float32),
    }


# ----------------------------- RepVGG block fusion (== get_equivalent_kernel_bias) -----------------------------
def _fuse_conv_bn(w, bn):
    gamma, beta, mean, var = bn
    std = jnp.sqrt(var + BN_EPS)
    t = (gamma / std).reshape(-1, 1, 1, 1)
    return w * t, beta - mean * gamma / std


def fuse_block(p):
    k3, b3 = _fuse_conv_bn(p["w3"], p["bn3"])
    k1, b1 = _fuse_conv_bn(p["w1"], p["bn1"])
    k1 = jnp.pad(k1, ((0, 0), (0, 0), (1, 1), (1, 1)))
    kernel = k3 + k1
    bias = b3 + b1
    if p["has_id"]:
        cin = p["w3"].shape[1]
        id_k = jnp.zeros((cin, cin, 3, 3), jnp.float32).at[:, :, 1, 1].set(jnp.eye(cin))
        kid, bid = _fuse_conv_bn(id_k, p["bnid"])
        kernel = kernel + kid
        bias = bias + bid
    return kernel, bias


# ----------------------------- one-time packing (hoisted out of the forward) -----------------------------
def pack_params(params, input_hw):
    """Fold conv+BN branches, stride, tap offsets and zero padding into
    per-layer (RH, M, bias) matmul operands: bf16 for the MXU, f32 biases."""
    h, w = input_hw
    layers = []
    for bp in params["blocks"]:
        k, b = fuse_block(bp)
        k = np.asarray(k, np.float32)          # (Cout, Cin, 3, 3)
        b = np.asarray(b, np.float32)          # (Cout,)
        cout, cin = k.shape[0], k.shape[1]
        s = bp["stride"]
        ho = (h + 2 - 3) // s + 1
        wo = (w + 2 - 3) // s + 1
        # RH[dh]: (Ho, H) 0/1 row gather: output row i reads input row i*s+dh-1
        rh = np.zeros((3, ho, h), np.float32)
        for dh in range(3):
            for i in range(ho):
                hi = i * s + dh - 1
                if 0 <= hi < h:
                    rh[dh, i, hi] = 1.0
        # M[dh]: (W*Cin, Wo*Cout): horizontal taps + stride + zero-pad folded
        # together with the fused conv weights.
        m = np.zeros((3, w * cin, wo * cout), np.float32)
        for dh in range(3):
            for j in range(wo):
                for dw in range(3):
                    wi = j * s + dw - 1
                    if 0 <= wi < w:
                        m[dh, wi * cin:(wi + 1) * cin,
                          j * cout:(j + 1) * cout] = k[:, :, dh, dw].T
        layers.append({
            "rh": jnp.asarray(rh, jnp.bfloat16),
            "m": jnp.asarray(m, jnp.bfloat16),
            "bias": jnp.asarray(np.tile(b, wo)[None, :], jnp.float32),   # (1, Wo*Cout)
        })
        h, w = ho, wo
    # GAP (mean over Ho*Wo) + Linear folded into one (Wo*C, 128) matrix,
    # classes zero-padded to 128 for a lane-dense output store.
    c_final = int(params["linear_w"].shape[1])
    lw = np.asarray(params["linear_w"], np.float32)     # (ncls, C)
    lb = np.asarray(params["linear_b"], np.float32)
    head_w = np.zeros((w * c_final, NCLS_PAD), np.float32)
    for j in range(w):
        head_w[j * c_final:(j + 1) * c_final, :NUM_CLASSES] = lw.T / float(h * w)
    head_b = np.zeros((1, NCLS_PAD), np.float32)
    head_b[0, :NUM_CLASSES] = lb
    return {
        "layers": layers,
        "head_w": jnp.asarray(head_w, jnp.bfloat16),
        "head_b": jnp.asarray(head_b, jnp.float32),
    }


# ----------------------------- fused Pallas forward -----------------------------
def make_fused_forward(packed, batch, in_ch, in_h, in_w):
    layers = packed["layers"]
    nl = len(layers)

    def kernel(*refs):
        x_ref = refs[0]
        layer_refs = refs[1:1 + 3 * nl]
        head_w_ref = refs[1 + 3 * nl]
        head_b_ref = refs[2 + 3 * nl]
        o_ref = refs[3 + 3 * nl]

        # Activation stays VMEM/vreg resident as a channel-minor (H, W*C) value.
        cur = x_ref[0].astype(jnp.bfloat16)
        out = None
        for l in range(nl):
            rh_ref = layer_refs[3 * l]
            m_ref = layer_refs[3 * l + 1]
            b_ref = layer_refs[3 * l + 2]
            acc = None
            for dh in range(3):                                  # 3 vertical taps
                hg = jnp.dot(rh_ref[dh], cur,                    # row gather (stride + pad)
                             preferred_element_type=jnp.float32)
                t = jnp.dot(hg.astype(jnp.bfloat16), m_ref[dh],  # taps x weights
                            preferred_element_type=jnp.float32)
                acc = t if acc is None else acc + t
            out = jnp.maximum(acc + b_ref[...], 0.0)             # f32 bias + ReLU epilogue
            if l + 1 < nl:
                cur = out.astype(jnp.bfloat16)

        # GAP + Linear epilogue (mean folded into head_w; classes padded to 128
        # so the single output store is lane-dense).
        pooled = jnp.sum(out, axis=0, keepdims=True)             # (1, Wo*C)
        logits = jnp.dot(pooled.astype(jnp.bfloat16), head_w_ref[...],
                         preferred_element_type=jnp.float32) + head_b_ref[...]
        o_ref[0] = logits

    in_specs = [pl.BlockSpec((1, in_h, in_w * in_ch), lambda n: (n, 0, 0))]
    operands = []
    for lyr in layers:
        in_specs.append(pl.BlockSpec(lyr["rh"].shape, lambda n: (0, 0, 0)))
        in_specs.append(pl.BlockSpec(lyr["m"].shape, lambda n: (0, 0, 0)))
        in_specs.append(pl.BlockSpec(lyr["bias"].shape, lambda n: (0, 0)))
        operands += [lyr["rh"], lyr["m"], lyr["bias"]]
    in_specs.append(pl.BlockSpec(packed["head_w"].shape, lambda n: (0, 0)))
    in_specs.append(pl.BlockSpec(packed["head_b"].shape, lambda n: (0, 0)))
    operands += [packed["head_w"], packed["head_b"]]

    fused = pl.pallas_call(
        kernel,
        out_shape=jax.ShapeDtypeStruct((batch, 1, NCLS_PAD), jnp.float32),
        grid_spec=pltpu.PrefetchScalarGridSpec(
            num_scalar_prefetch=0,
            grid=(batch,),                        # one image per grid step
            in_specs=in_specs,
            out_specs=pl.BlockSpec((1, 1, NCLS_PAD), lambda n: (n, 0, 0)),
        ),
        compiler_params=pltpu.CompilerParams(
            dimension_semantics=("parallel",),    # v7x: one image per TensorCore
            vmem_limit_bytes=32 * 1024 * 1024,
        ),
    )

    def forward(x_nchw):
        x_nhwc = jnp.transpose(x_nchw, (0, 2, 3, 1))              # NCHW -> NHWC (once)
        x2d = x_nhwc.reshape(batch, in_h, in_w * in_ch)           # channel-minor (H, W*C)
        out = fused(x2d, *operands)
        return out[:, 0, :NUM_CLASSES]

    return forward


if __name__ == "__main__":
    key = jax.random.PRNGKey(0)
    key, xkey = jax.random.split(key)
    batch, in_ch, in_h, in_w = 2, 3, 32, 32
    x = jax.random.normal(xkey, (batch, in_ch, in_h, in_w), jnp.float32)   # NCHW like PyTorch

    params = init_params(key)
    packed = pack_params(params, (in_h, in_w))        # one-time host-side packing (hoisted)
    forward = jax.jit(make_fused_forward(packed, batch, in_ch, in_h, in_w))

    out = jax.block_until_ready(forward(x))
    assert out.shape == (batch, NUM_CLASSES), out.shape
    assert bool(jnp.all(jnp.isfinite(out)))
    print("KERNEL_OK")
</pallas_src>

<mosaic_0001>
module attributes {stable_mosaic.version = 11 : i64} {
  func.func @kernel(%arg0: i32, %arg1: memref<1x32x96xf32, #tpu.memory_space<vmem>>, %arg2: memref<3x16x32xbf16, #tpu.memory_space<vmem>>, %arg3: memref<3x96x256xbf16, #tpu.memory_space<vmem>>, %arg4: memref<1x256xf32, #tpu.memory_space<vmem>>, %arg5: memref<3x8x16xbf16, #tpu.memory_space<vmem>>, %arg6: memref<3x256x128xbf16, #tpu.memory_space<vmem>>, %arg7: memref<1x128xf32, #tpu.memory_space<vmem>>, %arg8: memref<3x8x8xbf16, #tpu.memory_space<vmem>>, %arg9: memref<3x128x128xbf16, #tpu.memory_space<vmem>>, %arg10: memref<1x128xf32, #tpu.memory_space<vmem>>, %arg11: memref<3x4x8xbf16, #tpu.memory_space<vmem>>, %arg12: memref<3x128x128xbf16, #tpu.memory_space<vmem>>, %arg13: memref<1x128xf32, #tpu.memory_space<vmem>>, %arg14: memref<3x2x4xbf16, #tpu.memory_space<vmem>>, %arg15: memref<3x128x128xbf16, #tpu.memory_space<vmem>>, %arg16: memref<1x128xf32, #tpu.memory_space<vmem>>, %arg17: memref<3x1x2xbf16, #tpu.memory_space<vmem>>, %arg18: memref<3x128x128xbf16, #tpu.memory_space<vmem>>, %arg19: memref<1x128xf32, #tpu.memory_space<vmem>>, %arg20: memref<128x128xbf16, #tpu.memory_space<vmem>>, %arg21: memref<1x128xf32, #tpu.memory_space<vmem>>, %arg22: memref<1x1x128xf32, #tpu.memory_space<vmem>>) attributes {dimension_semantics = [#tpu.dimension_semantics<parallel>], iteration_bounds = array<i64: 2>, scalar_prefetch = 0 : i64, scratch_operands = 0 : i64, tpu.core_type = #tpu.core_type<tc>, window_params = [{transform_indices = @transform_0, window_bounds = array<i64: 1, 32, 96>}, {pipeline_mode = #tpu.pipeline_mode<synchronous>, transform_indices = @transform_1, window_bounds = array<i64: 3, 16, 32>}, {pipeline_mode = #tpu.pipeline_mode<synchronous>, transform_indices = @transform_2, window_bounds = array<i64: 3, 96, 256>}, {pipeline_mode = #tpu.pipeline_mode<synchronous>, transform_indices = @transform_3, window_bounds = array<i64: 1, 256>}, {pipeline_mode = #tpu.pipeline_mode<synchronous>, transform_indices = @transform_4, window_bounds = array<i64: 3, 8, 16>}, {pipeline_mode = #tpu.pipeline_mode<synchronous>, transform_indices = @transform_5, window_bounds = array<i64: 3, 256, 128>}, {pipeline_mode = #tpu.pipeline_mode<synchronous>, transform_indices = @transform_6, window_bounds = array<i64: 1, 128>}, {pipeline_mode = #tpu.pipeline_mode<synchronous>, transform_indices = @transform_7, window_bounds = array<i64: 3, 8, 8>}, {pipeline_mode = #tpu.pipeline_mode<synchronous>, transform_indices = @transform_8, window_bounds = array<i64: 3, 128, 128>}, {pipeline_mode = #tpu.pipeline_mode<synchronous>, transform_indices = @transform_9, window_bounds = array<i64: 1, 128>}, {pipeline_mode = #tpu.pipeline_mode<synchronous>, transform_indices = @transform_10, window_bounds = array<i64: 3, 4, 8>}, {pipeline_mode = #tpu.pipeline_mode<synchronous>, transform_indices = @transform_11, window_bounds = array<i64: 3, 128, 128>}, {pipeline_mode = #tpu.pipeline_mode<synchronous>, transform_indices = @transform_12, window_bounds = array<i64: 1, 128>}, {pipeline_mode = #tpu.pipeline_mode<synchronous>, transform_indices = @transform_13, window_bounds = array<i64: 3, 2, 4>}, {pipeline_mode = #tpu.pipeline_mode<synchronous>, transform_indices = @transform_14, window_bounds = array<i64: 3, 128, 128>}, {pipeline_mode = #tpu.pipeline_mode<synchronous>, transform_indices = @transform_15, window_bounds = array<i64: 1, 128>}, {pipeline_mode = #tpu.pipeline_mode<synchronous>, transform_indices = @transform_16, window_bounds = array<i64: 3, 1, 2>}, {pipeline_mode = #tpu.pipeline_mode<synchronous>, transform_indices = @transform_17, window_bounds = array<i64: 3, 128, 128>}, {pipeline_mode = #tpu.pipeline_mode<synchronous>, transform_indices = @transform_18, window_bounds = array<i64: 1, 128>}, {pipeline_mode = #tpu.pipeline_mode<synchronous>, transform_indices = @transform_19, window_bounds = array<i64: 128, 128>}, {pipeline_mode = #tpu.pipeline_mode<synchronous>, transform_indices = @transform_20, window_bounds = array<i64: 1, 128>}, {transform_indices = @transform_21, window_bounds = array<i64: 1, 1, 128>}]} {
    %c0 = arith.constant 0 : index
    %c0_0 = arith.constant 0 : index
    %c0_1 = arith.constant 0 : index
    %0 = vector.load %arg1[%c0, %c0_0, %c0_1] : memref<1x32x96xf32, #tpu.memory_space<vmem>>, vector<1x32x96xf32>
    %1 = vector.shape_cast %0 : vector<1x32x96xf32> to vector<32x96xf32>
    %2 = arith.truncf %1 : vector<32x96xf32> to vector<32x96xbf16>
    %c0_2 = arith.constant 0 : index
    %c0_3 = arith.constant 0 : index
    %c0_4 = arith.constant 0 : index
    %3 = vector.load %arg2[%c0_2, %c0_3, %c0_4] : memref<3x16x32xbf16, #tpu.memory_space<vmem>>, vector<1x16x32xbf16>
    %4 = vector.shape_cast %3 : vector<1x16x32xbf16> to vector<16x32xbf16>
    %cst = arith.constant dense<0.000000e+00> : vector<16x96xf32>
    %5 = tpu.matmul %4, %2, %cst {dimension_numbers = #tpu.dot_dimension_numbers<[1], [0], [0], [1], [0, 0, 1, 1], [], []>} : vector<16x32xbf16>, vector<32x96xbf16>, vector<16x96xf32> -> vector<16x96xf32>
    %6 = arith.truncf %5 : vector<16x96xf32> to vector<16x96xbf16>
    %c0_5 = arith.constant 0 : index
    %c0_6 = arith.constant 0 : index
    %c0_7 = arith.constant 0 : index
    %7 = vector.load %arg3[%c0_5, %c0_6, %c0_7] : memref<3x96x256xbf16, #tpu.memory_space<vmem>>, vector<1x96x256xbf16>
    %8 = vector.shape_cast %7 : vector<1x96x256xbf16> to vector<96x256xbf16>
    %cst_8 = arith.constant dense<0.000000e+00> : vector<16x256xf32>
    %9 = tpu.matmul %6, %8, %cst_8 {dimension_numbers = #tpu.dot_dimension_numbers<[1], [0], [0], [1], [0, 0, 1, 1], [], []>} : vector<16x96xbf16>, vector<96x256xbf16>, vector<16x256xf32> -> vector<16x256xf32>
    %c1 = arith.constant 1 : index
    %c0_9 = arith.constant 0 : index
    %c0_10 = arith.constant 0 : index
    %10 = vector.load %arg2[%c1, %c0_9, %c0_10] : memref<3x16x32xbf16, #tpu.memory_space<vmem>>, vector<1x16x32xbf16>
    %11 = vector.shape_cast %10 : vector<1x16x32xbf16> to vector<16x32xbf16>
    %cst_11 = arith.constant dense<0.000000e+00> : vector<16x96xf32>
    %12 = tpu.matmul %11, %2, %cst_11 {dimension_numbers = #tpu.dot_dimension_numbers<[1], [0], [0], [1], [0, 0, 1, 1], [], []>} : vector<16x32xbf16>, vector<32x96xbf16>, vector<16x96xf32> -> vector<16x96xf32>
    %13 = arith.truncf %12 : vector<16x96xf32> to vector<16x96xbf16>
    %c1_12 = arith.constant 1 : index
    %c0_13 = arith.constant 0 : index
    %c0_14 = arith.constant 0 : index
    %14 = vector.load %arg3[%c1_12, %c0_13, %c0_14] : memref<3x96x256xbf16, #tpu.memory_space<vmem>>, vector<1x96x256xbf16>
    %15 = vector.shape_cast %14 : vector<1x96x256xbf16> to vector<96x256xbf16>
    %cst_15 = arith.constant dense<0.000000e+00> : vector<16x256xf32>
    %16 = tpu.matmul %13, %15, %cst_15 {dimension_numbers = #tpu.dot_dimension_numbers<[1], [0], [0], [1], [0, 0, 1, 1], [], []>} : vector<16x96xbf16>, vector<96x256xbf16>, vector<16x256xf32> -> vector<16x256xf32>
    %17 = arith.addf %9, %16 : vector<16x256xf32>
    %c2 = arith.constant 2 : index
    %c0_16 = arith.constant 0 : index
    %c0_17 = arith.constant 0 : index
    %18 = vector.load %arg2[%c2, %c0_16, %c0_17] : memref<3x16x32xbf16, #tpu.memory_space<vmem>>, vector<1x16x32xbf16>
    %19 = vector.shape_cast %18 : vector<1x16x32xbf16> to vector<16x32xbf16>
    %cst_18 = arith.constant dense<0.000000e+00> : vector<16x96xf32>
    %20 = tpu.matmul %19, %2, %cst_18 {dimension_numbers = #tpu.dot_dimension_numbers<[1], [0], [0], [1], [0, 0, 1, 1], [], []>} : vector<16x32xbf16>, vector<32x96xbf16>, vector<16x96xf32> -> vector<16x96xf32>
    %21 = arith.truncf %20 : vector<16x96xf32> to vector<16x96xbf16>
    %c2_19 = arith.constant 2 : index
    %c0_20 = arith.constant 0 : index
    %c0_21 = arith.constant 0 : index
    %22 = vector.load %arg3[%c2_19, %c0_20, %c0_21] : memref<3x96x256xbf16, #tpu.memory_space<vmem>>, vector<1x96x256xbf16>
    %23 = vector.shape_cast %22 : vector<1x96x256xbf16> to vector<96x256xbf16>
    %cst_22 = arith.constant dense<0.000000e+00> : vector<16x256xf32>
    %24 = tpu.matmul %21, %23, %cst_22 {dimension_numbers = #tpu.dot_dimension_numbers<[1], [0], [0], [1], [0, 0, 1, 1], [], []>} : vector<16x96xbf16>, vector<96x256xbf16>, vector<16x256xf32> -> vector<16x256xf32>
    %25 = arith.addf %17, %24 : vector<16x256xf32>
    %c0_23 = arith.constant 0 : index
    %c0_24 = arith.constant 0 : index
    %26 = vector.load %arg4[%c0_23, %c0_24] : memref<1x256xf32, #tpu.memory_space<vmem>>, vector<1x256xf32>
    %27 = vector.broadcast %26 : vector<1x256xf32> to vector<16x256xf32>
    %28 = arith.addf %25, %27 : vector<16x256xf32>
    %cst_25 = arith.constant 0.000000e+00 : f32
    %29 = vector.broadcast %cst_25 : f32 to vector<16x256xf32>
    %30 = arith.maximumf %28, %29 : vector<16x256xf32>
    %31 = arith.truncf %30 : vector<16x256xf32> to vector<16x256xbf16>
    %c0_26 = arith.constant 0 : index
    %c0_27 = arith.constant 0 : index
    %c0_28 = arith.constant 0 : index
    %32 = vector.load %arg5[%c0_26, %c0_27, %c0_28] : memref<3x8x16xbf16, #tpu.memory_space<vmem>>, vector<1x8x16xbf16>
    %33 = vector.shape_cast %32 : vector<1x8x16xbf16> to vector<8x16xbf16>
    %cst_29 = arith.constant dense<0.000000e+00> : vector<8x256xf32>
    %34 = tpu.matmul %33, %31, %cst_29 {dimension_numbers = #tpu.dot_dimension_numbers<[1], [0], [0], [1], [0, 0, 1, 1], [], []>} : vector<8x16xbf16>, vector<16x256xbf16>, vector<8x256xf32> -> vector<8x256xf32>
    %35 = arith.truncf %34 : vector<8x256xf32> to vector<8x256xbf16>
    %c0_30 = arith.constant 0 : index
    %c0_31 = arith.constant 0 : index
    %c0_32 = arith.constant 0 : index
    %36 = vector.load %arg6[%c0_30, %c0_31, %c0_32] : memref<3x256x128xbf16, #tpu.memory_space<vmem>>, vector<1x256x128xbf16>
    %37 = vector.shape_cast %36 : vector<1x256x128xbf16> to vector<256x128xbf16>
    %cst_33 = arith.constant dense<0.000000e+00> : vector<8x128xf32>
    %38 = tpu.matmul %35, %37, %cst_33 {dimension_numbers = #tpu.dot_dimension_numbers<[1], [0], [0], [1], [0, 0, 1, 1], [], []>} : vector<8x256xbf16>, vector<256x128xbf16>, vector<8x128xf32> -> vector<8x128xf32>
    %c1_34 = arith.constant 1 : index
    %c0_35 = arith.constant 0 : index
    %c0_36 = arith.constant 0 : index
    %39 = vector.load %arg5[%c1_34, %c0_35, %c0_36] : memref<3x8x16xbf16, #tpu.memory_space<vmem>>, vector<1x8x16xbf16>
    %40 = vector.shape_cast %39 : vector<1x8x16xbf16> to vector<8x16xbf16>
    %cst_37 = arith.constant dense<0.000000e+00> : vector<8x256xf32>
    %41 = tpu.matmul %40, %31, %cst_37 {dimension_numbers = #tpu.dot_dimension_numbers<[1], [0], [0], [1], [0, 0, 1, 1], [], []>} : vector<8x16xbf16>, vector<16x256xbf16>, vector<8x256xf32> -> vector<8x256xf32>
    %42 = arith.truncf %41 : vector<8x256xf32> to vector<8x256xbf16>
    %c1_38 = arith.constant 1 : index
    %c0_39 = arith.constant 0 : index
    %c0_40 = arith.constant 0 : index
    %43 = vector.load %arg6[%c1_38, %c0_39, %c0_40] : memref<3x256x128xbf16, #tpu.memory_space<vmem>>, vector<1x256x128xbf16>
    %44 = vector.shape_cast %43 : vector<1x256x128xbf16> to vector<256x128xbf16>
    %cst_41 = arith.constant dense<0.000000e+00> : vector<8x128xf32>
    %45 = tpu.matmul %42, %44, %cst_41 {dimension_numbers = #tpu.dot_dimension_numbers<[1], [0], [0], [1], [0, 0, 1, 1], [], []>} : vector<8x256xbf16>, vector<256x128xbf16>, vector<8x128xf32> -> vector<8x128xf32>
    %46 = arith.addf %38, %45 : vector<8x128xf32>
    %c2_42 = arith.constant 2 : index
    %c0_43 = arith.constant 0 : index
    %c0_44 = arith.constant 0 : index
    %47 = vector.load %arg5[%c2_42, %c0_43, %c0_44] : memref<3x8x16xbf16, #tpu.memory_space<vmem>>, vector<1x8x16xbf16>
    %48 = vector.shape_cast %47 : vector<1x8x16xbf16> to vector<8x16xbf16>
    %cst_45 = arith.constant dense<0.000000e+00> : vector<8x256xf32>
    %49 = tpu.matmul %48, %31, %cst_45 {dimension_numbers = #tpu.dot_dimension_numbers<[1], [0], [0], [1], [0, 0, 1, 1], [], []>} : vector<8x16xbf16>, vector<16x256xbf16>, vector<8x256xf32> -> vector<8x256xf32>
    %50 = arith.truncf %49 : vector<8x256xf32> to vector<8x256xbf16>
    %c2_46 = arith.constant 2 : index
    %c0_47 = arith.constant 0 : index
    %c0_48 = arith.constant 0 : index
    %51 = vector.load %arg6[%c2_46, %c0_47, %c0_48] : memref<3x256x128xbf16, #tpu.memory_space<vmem>>, vector<1x256x128xbf16>
    %52 = vector.shape_cast %51 : vector<1x256x128xbf16> to vector<256x128xbf16>
    %cst_49 = arith.constant dense<0.000000e+00> : vector<8x128xf32>
    %53 = tpu.matmul %50, %52, %cst_49 {dimension_numbers = #tpu.dot_dimension_numbers<[1], [0], [0], [1], [0, 0, 1, 1], [], []>} : vector<8x256xbf16>, vector<256x128xbf16>, vector<8x128xf32> -> vector<8x128xf32>
    %54 = arith.addf %46, %53 : vector<8x128xf32>
    %c0_50 = arith.constant 0 : index
    %c0_51 = arith.constant 0 : index
    %55 = vector.load %arg7[%c0_50, %c0_51] : memref<1x128xf32, #tpu.memory_space<vmem>>, vector<1x128xf32>
    %56 = vector.broadcast %55 : vector<1x128xf32> to vector<8x128xf32>
    %57 = arith.addf %54, %56 : vector<8x128xf32>
    %cst_52 = arith.constant 0.000000e+00 : f32
    %58 = vector.broadcast %cst_52 : f32 to vector<8x128xf32>
    %59 = arith.maximumf %57, %58 : vector<8x128xf32>
    %60 = arith.truncf %59 : vector<8x128xf32> to vector<8x128xbf16>
    %c0_53 = arith.constant 0 : index
    %c0_54 = arith.constant 0 : index
    %c0_55 = arith.constant 0 : index
    %61 = vector.load %arg8[%c0_53, %c0_54, %c0_55] : memref<3x8x8xbf16, #tpu.memory_space<vmem>>, vector<1x8x8xbf16>
    %62 = vector.shape_cast %61 : vector<1x8x8xbf16> to vector<8x8xbf16>
    %cst_56 = arith.constant dense<0.000000e+00> : vector<8x128xf32>
    %63 = tpu.matmul %62, %60, %cst_56 {dimension_numbers = #tpu.dot_dimension_numbers<[1], [0], [0], [1], [0, 0, 1, 1], [], []>} : vector<8x8xbf16>, vector<8x128xbf16>, vector<8x128xf32> -> vector<8x128xf32>
    %64 = arith.truncf %63 : vector<8x128xf32> to vector<8x128xbf16>
    %c0_57 = arith.constant 0 : index
    %c0_58 = arith.constant 0 : index
    %c0_59 = arith.constant 0 : index
    %65 = vector.load %arg9[%c0_57, %c0_58, %c0_59] : memref<3x128x128xbf16, #tpu.memory_space<vmem>>, vector<1x128x128xbf16>
    %66 = vector.shape_cast %65 : vector<1x128x128xbf16> to vector<128x128xbf16>
    %cst_60 = arith.constant dense<0.000000e+00> : vector<8x128xf32>
    %67 = tpu.matmul %64, %66, %cst_60 {dimension_numbers = #tpu.dot_dimension_numbers<[1], [0], [0], [1], [0, 0, 1, 1], [], []>} : vector<8x128xbf16>, vector<128x128xbf16>, vector<8x128xf32> -> vector<8x128xf32>
    %c1_61 = arith.constant 1 : index
    %c0_62 = arith.constant 0 : index
    %c0_63 = arith.constant 0 : index
    %68 = vector.load %arg8[%c1_61, %c0_62, %c0_63] : memref<3x8x8xbf16, #tpu.memory_space<vmem>>, vector<1x8x8xbf16>
    %69 = vector.shape_cast %68 : vector<1x8x8xbf16> to vector<8x8xbf16>
    %cst_64 = arith.constant dense<0.000000e+00> : vector<8x128xf32>
    %70 = tpu.matmul %69, %60, %cst_64 {dimension_numbers = #tpu.dot_dimension_numbers<[1], [0], [0], [1], [0, 0, 1, 1], [], []>} : vector<8x8xbf16>, vector<8x128xbf16>, vector<8x128xf32> -> vector<8x128xf32>
    %71 = arith.truncf %70 : vector<8x128xf32> to vector<8x128xbf16>
    %c1_65 = arith.constant 1 : index
    %c0_66 = arith.constant 0 : index
    %c0_67 = arith.constant 0 : index
    %72 = vector.load %arg9[%c1_65, %c0_66, %c0_67] : memref<3x128x128xbf16, #tpu.memory_space<vmem>>, vector<1x128x128xbf16>
    %73 = vector.shape_cast %72 : vector<1x128x128xbf16> to vector<128x128xbf16>
    %cst_68 = arith.constant dense<0.000000e+00> : vector<8x128xf32>
    %74 = tpu.matmul %71, %73, %cst_68 {dimension_numbers = #tpu.dot_dimension_numbers<[1], [0], [0], [1], [0, 0, 1, 1], [], []>} : vector<8x128xbf16>, vector<128x128xbf16>, vector<8x128xf32> -> vector<8x128xf32>
    %75 = arith.addf %67, %74 : vector<8x128xf32>
    %c2_69 = arith.constant 2 : index
    %c0_70 = arith.constant 0 : index
    %c0_71 = arith.constant 0 : index
    %76 = vector.load %arg8[%c2_69, %c0_70, %c0_71] : memref<3x8x8xbf16, #tpu.memory_space<vmem>>, vector<1x8x8xbf16>
    %77 = vector.shape_cast %76 : vector<1x8x8xbf16> to vector<8x8xbf16>
    %cst_72 = arith.constant dense<0.000000e+00> : vector<8x128xf32>
    %78 = tpu.matmul %77, %60, %cst_72 {dimension_numbers = #tpu.dot_dimension_numbers<[1], [0], [0], [1], [0, 0, 1, 1], [], []>} : vector<8x8xbf16>, vector<8x128xbf16>, vector<8x128xf32> -> vector<8x128xf32>
    %79 = arith.truncf %78 : vector<8x128xf32> to vector<8x128xbf16>
    %c2_73 = arith.constant 2 : index
    %c0_74 = arith.constant 0 : index
    %c0_75 = arith.constant 0 : index
    %80 = vector.load %arg9[%c2_73, %c0_74, %c0_75] : memref<3x128x128xbf16, #tpu.memory_space<vmem>>, vector<1x128x128xbf16>
    %81 = vector.shape_cast %80 : vector<1x128x128xbf16> to vector<128x128xbf16>
    %cst_76 = arith.constant dense<0.000000e+00> : vector<8x128xf32>
    %82 = tpu.matmul %79, %81, %cst_76 {dimension_numbers = #tpu.dot_dimension_numbers<[1], [0], [0], [1], [0, 0, 1, 1], [], []>} : vector<8x128xbf16>, vector<128x128xbf16>, vector<8x128xf32> -> vector<8x128xf32>
    %83 = arith.addf %75, %82 : vector<8x128xf32>
    %c0_77 = arith.constant 0 : index
    %c0_78 = arith.constant 0 : index
    %84 = vector.load %arg10[%c0_77, %c0_78] : memref<1x128xf32, #tpu.memory_space<vmem>>, vector<1x128xf32>
    %85 = vector.broadcast %84 : vector<1x128xf32> to vector<8x128xf32>
    %86 = arith.addf %83, %85 : vector<8x128xf32>
    %cst_79 = arith.constant 0.000000e+00 : f32
    %87 = vector.broadcast %cst_79 : f32 to vector<8x128xf32>
    %88 = arith.maximumf %86, %87 : vector<8x128xf32>
    %89 = arith.truncf %88 : vector<8x128xf32> to vector<8x128xbf16>
    %c0_80 = arith.constant 0 : index
    %c0_81 = arith.constant 0 : index
    %c0_82 = arith.constant 0 : index
    %90 = vector.load %arg11[%c0_80, %c0_81, %c0_82] : memref<3x4x8xbf16, #tpu.memory_space<vmem>>, vector<1x4x8xbf16>
    %91 = vector.shape_cast %90 : vector<1x4x8xbf16> to vector<4x8xbf16>
    %cst_83 = arith.constant dense<0.000000e+00> : vector<4x128xf32>
    %92 = tpu.matmul %91, %89, %cst_83 {dimension_numbers = #tpu.dot_dimension_numbers<[1], [0], [0], [1], [0, 0, 1, 1], [], []>} : vector<4x8xbf16>, vector<8x128xbf16>, vector<4x128xf32> -> vector<4x128xf32>
    %93 = arith.truncf %92 : vector<4x128xf32> to vector<4x128xbf16>
    %c0_84 = arith.constant 0 : index
    %c0_85 = arith.constant 0 : index
    %c0_86 = arith.constant 0 : index
    %94 = vector.load %arg12[%c0_84, %c0_85, %c0_86] : memref<3x128x128xbf16, #tpu.memory_space<vmem>>, vector<1x128x128xbf16>
    %95 = vector.shape_cast %94 : vector<1x128x128xbf16> to vector<128x128xbf16>
    %cst_87 = arith.constant dense<0.000000e+00> : vector<4x128xf32>
    %96 = tpu.matmul %93, %95, %cst_87 {dimension_numbers = #tpu.dot_dimension_numbers<[1], [0], [0], [1], [0, 0, 1, 1], [], []>} : vector<4x128xbf16>, vector<128x128xbf16>, vector<4x128xf32> -> vector<4x128xf32>
    %c1_88 = arith.constant 1 : index
    %c0_89 = arith.constant 0 : index
    %c0_90 = arith.constant 0 : index
    %97 = vector.load %arg11[%c1_88, %c0_89, %c0_90] : memref<3x4x8xbf16, #tpu.memory_space<vmem>>, vector<1x4x8xbf16>
    %98 = vector.shape_cast %97 : vector<1x4x8xbf16> to vector<4x8xbf16>
    %cst_91 = arith.constant dense<0.000000e+00> : vector<4x128xf32>
    %99 = tpu.matmul %98, %89, %cst_91 {dimension_numbers = #tpu.dot_dimension_numbers<[1], [0], [0], [1], [0, 0, 1, 1], [], []>} : vector<4x8xbf16>, vector<8x128xbf16>, vector<4x128xf32> -> vector<4x128xf32>
    %100 = arith.truncf %99 : vector<4x128xf32> to vector<4x128xbf16>
    %c1_92 = arith.constant 1 : index
    %c0_93 = arith.constant 0 : index
    %c0_94 = arith.constant 0 : index
    %101 = vector.load %arg12[%c1_92, %c0_93, %c0_94] : memref<3x128x128xbf16, #tpu.memory_space<vmem>>, vector<1x128x128xbf16>
    %102 = vector.shape_cast %101 : vector<1x128x128xbf16> to vector<128x128xbf16>
    %cst_95 = arith.constant dense<0.000000e+00> : vector<4x128xf32>
    %103 = tpu.matmul %100, %102, %cst_95 {dimension_numbers = #tpu.dot_dimension_numbers<[1], [0], [0], [1], [0, 0, 1, 1], [], []>} : vector<4x128xbf16>, vector<128x128xbf16>, vector<4x128xf32> -> vector<4x128xf32>
    %104 = arith.addf %96, %103 : vector<4x128xf32>
    %c2_96 = arith.constant 2 : index
    %c0_97 = arith.constant 0 : index
    %c0_98 = arith.constant 0 : index
    %105 = vector.load %arg11[%c2_96, %c0_97, %c0_98] : memref<3x4x8xbf16, #tpu.memory_space<vmem>>, vector<1x4x8xbf16>
    %106 = vector.shape_cast %105 : vector<1x4x8xbf16> to vector<4x8xbf16>
    %cst_99 = arith.constant dense<0.000000e+00> : vector<4x128xf32>
    %107 = tpu.matmul %106, %89, %cst_99 {dimension_numbers = #tpu.dot_dimension_numbers<[1], [0], [0], [1], [0, 0, 1, 1], [], []>} : vector<4x8xbf16>, vector<8x128xbf16>, vector<4x128xf32> -> vector<4x128xf32>
    %108 = arith.truncf %107 : vector<4x128xf32> to vector<4x128xbf16>
    %c2_100 = arith.constant 2 : index
    %c0_101 = arith.constant 0 : index
    %c0_102 = arith.constant 0 : index
    %109 = vector.load %arg12[%c2_100, %c0_101, %c0_102] : memref<3x128x128xbf16, #tpu.memory_space<vmem>>, vector<1x128x128xbf16>
    %110 = vector.shape_cast %109 : vector<1x128x128xbf16> to vector<128x128xbf16>
    %cst_103 = arith.constant dense<0.000000e+00> : vector<4x128xf32>
    %111 = tpu.matmul %108, %110, %cst_103 {dimension_numbers = #tpu.dot_dimension_numbers<[1], [0], [0], [1], [0, 0, 1, 1], [], []>} : vector<4x128xbf16>, vector<128x128xbf16>, vector<4x128xf32> -> vector<4x128xf32>
    %112 = arith.addf %104, %111 : vector<4x128xf32>
    %c0_104 = arith.constant 0 : index
    %c0_105 = arith.constant 0 : index
    %113 = vector.load %arg13[%c0_104, %c0_105] : memref<1x128xf32, #tpu.memory_space<vmem>>, vector<1x128xf32>
    %114 = vector.broadcast %113 : vector<1x128xf32> to vector<4x128xf32>
    %115 = arith.addf %112, %114 : vector<4x128xf32>
    %cst_106 = arith.constant 0.000000e+00 : f32
    %116 = vector.broadcast %cst_106 : f32 to vector<4x128xf32>
    %117 = arith.maximumf %115, %116 : vector<4x128xf32>
    %118 = arith.truncf %117 : vector<4x128xf32> to vector<4x128xbf16>
    %c0_107 = arith.constant 0 : index
    %c0_108 = arith.constant 0 : index
    %c0_109 = arith.constant 0 : index
    %119 = vector.load %arg14[%c0_107, %c0_108, %c0_109] : memref<3x2x4xbf16, #tpu.memory_space<vmem>>, vector<1x2x4xbf16>
    %120 = vector.shape_cast %119 : vector<1x2x4xbf16> to vector<2x4xbf16>
    %cst_110 = arith.constant dense<0.000000e+00> : vector<2x128xf32>
    %121 = tpu.matmul %120, %118, %cst_110 {dimension_numbers = #tpu.dot_dimension_numbers<[1], [0], [0], [1], [0, 0, 1, 1], [], []>} : vector<2x4xbf16>, vector<4x128xbf16>, vector<2x128xf32> -> vector<2x128xf32>
    %122 = arith.truncf %121 : vector<2x128xf32> to vector<2x128xbf16>
    %c0_111 = arith.constant 0 : index
    %c0_112 = arith.constant 0 : index
    %c0_113 = arith.constant 0 : index
    %123 = vector.load %arg15[%c0_111, %c0_112, %c0_113] : memref<3x128x128xbf16, #tpu.memory_space<vmem>>, vector<1x128x128xbf16>
    %124 = vector.shape_cast %123 : vector<1x128x128xbf16> to vector<128x128xbf16>
    %cst_114 = arith.constant dense<0.000000e+00> : vector<2x128xf32>
    %125 = tpu.matmul %122, %124, %cst_114 {dimension_numbers = #tpu.dot_dimension_numbers<[1], [0], [0], [1], [0, 0, 1, 1], [], []>} : vector<2x128xbf16>, vector<128x128xbf16>, vector<2x128xf32> -> vector<2x128xf32>
    %c1_115 = arith.constant 1 : index
    %c0_116 = arith.constant 0 : index
    %c0_117 = arith.constant 0 : index
    %126 = vector.load %arg14[%c1_115, %c0_116, %c0_117] : memref<3x2x4xbf16, #tpu.memory_space<vmem>>, vector<1x2x4xbf16>
    %127 = vector.shape_cast %126 : vector<1x2x4xbf16> to vector<2x4xbf16>
    %cst_118 = arith.constant dense<0.000000e+00> : vector<2x128xf32>
    %128 = tpu.matmul %127, %118, %cst_118 {dimension_numbers = #tpu.dot_dimension_numbers<[1], [0], [0], [1], [0, 0, 1, 1], [], []>} : vector<2x4xbf16>, vector<4x128xbf16>, vector<2x128xf32> -> vector<2x128xf32>
    %129 = arith.truncf %128 : vector<2x128xf32> to vector<2x128xbf16>
    %c1_119 = arith.constant 1 : index
    %c0_120 = arith.constant 0 : index
    %c0_121 = arith.constant 0 : index
    %130 = vector.load %arg15[%c1_119, %c0_120, %c0_121] : memref<3x128x128xbf16, #tpu.memory_space<vmem>>, vector<1x128x128xbf16>
    %131 = vector.shape_cast %130 : vector<1x128x128xbf16> to vector<128x128xbf16>
    %cst_122 = arith.constant dense<0.000000e+00> : vector<2x128xf32>
    %132 = tpu.matmul %129, %131, %cst_122 {dimension_numbers = #tpu.dot_dimension_numbers<[1], [0], [0], [1], [0, 0, 1, 1], [], []>} : vector<2x128xbf16>, vector<128x128xbf16>, vector<2x128xf32> -> vector<2x128xf32>
    %133 = arith.addf %125, %132 : vector<2x128xf32>
    %c2_123 = arith.constant 2 : index
    %c0_124 = arith.constant 0 : index
    %c0_125 = arith.constant 0 : index
    %134 = vector.load %arg14[%c2_123, %c0_124, %c0_125] : memref<3x2x4xbf16, #tpu.memory_space<vmem>>, vector<1x2x4xbf16>
    %135 = vector.shape_cast %134 : vector<1x2x4xbf16> to vector<2x4xbf16>
    %cst_126 = arith.constant dense<0.000000e+00> : vector<2x128xf32>
    %136 = tpu.matmul %135, %118, %cst_126 {dimension_numbers = #tpu.dot_dimension_numbers<[1], [0], [0], [1], [0, 0, 1, 1], [], []>} : vector<2x4xbf16>, vector<4x128xbf16>, vector<2x128xf32> -> vector<2x128xf32>
    %137 = arith.truncf %136 : vector<2x128xf32> to vector<2x128xbf16>
    %c2_127 = arith.constant 2 : index
    %c0_128 = arith.constant 0 : index
    %c0_129 = arith.constant 0 : index
    %138 = vector.load %arg15[%c2_127, %c0_128, %c0_129] : memref<3x128x128xbf16, #tpu.memory_space<vmem>>, vector<1x128x128xbf16>
    %139 = vector.shape_cast %138 : vector<1x128x128xbf16> to vector<128x128xbf16>
    %cst_130 = arith.constant dense<0.000000e+00> : vector<2x128xf32>
    %140 = tpu.matmul %137, %139, %cst_130 {dimension_numbers = #tpu.dot_dimension_numbers<[1], [0], [0], [1], [0, 0, 1, 1], [], []>} : vector<2x128xbf16>, vector<128x128xbf16>, vector<2x128xf32> -> vector<2x128xf32>
    %141 = arith.addf %133, %140 : vector<2x128xf32>
    %c0_131 = arith.constant 0 : index
    %c0_132 = arith.constant 0 : index
    %142 = vector.load %arg16[%c0_131, %c0_132] : memref<1x128xf32, #tpu.memory_space<vmem>>, vector<1x128xf32>
    %143 = vector.broadcast %142 : vector<1x128xf32> to vector<2x128xf32>
    %144 = arith.addf %141, %143 : vector<2x128xf32>
    %cst_133 = arith.constant 0.000000e+00 : f32
    %145 = vector.broadcast %cst_133 : f32 to vector<2x128xf32>
    %146 = arith.maximumf %144, %145 : vector<2x128xf32>
    %147 = arith.truncf %146 : vector<2x128xf32> to vector<2x128xbf16>
    %c0_134 = arith.constant 0 : index
    %c0_135 = arith.constant 0 : index
    %c0_136 = arith.constant 0 : index
    %148 = vector.load %arg17[%c0_134, %c0_135, %c0_136] : memref<3x1x2xbf16, #tpu.memory_space<vmem>>, vector<1x1x2xbf16>
    %149 = vector.shape_cast %148 : vector<1x1x2xbf16> to vector<1x2xbf16>
    %cst_137 = arith.constant dense<0.000000e+00> : vector<1x128xf32>
    %150 = tpu.matmul %149, %147, %cst_137 {dimension_numbers = #tpu.dot_dimension_numbers<[1], [0], [0], [1], [0, 0, 1, 1], [], []>} : vector<1x2xbf16>, vector<2x128xbf16>, vector<1x128xf32> -> vector<1x128xf32>
    %151 = arith.truncf %150 : vector<1x128xf32> to vector<1x128xbf16>
    %c0_138 = arith.constant 0 : index
    %c0_139 = arith.constant 0 : index
    %c0_140 = arith.constant 0 : index
    %152 = vector.load %arg18[%c0_138, %c0_139, %c0_140] : memref<3x128x128xbf16, #tpu.memory_space<vmem>>, vector<1x128x128xbf16>
    %153 = vector.shape_cast %152 : vector<1x128x128xbf16> to vector<128x128xbf16>
    %cst_141 = arith.constant dense<0.000000e+00> : vector<1x128xf32>
    %154 = tpu.matmul %151, %153, %cst_141 {dimension_numbers = #tpu.dot_dimension_numbers<[1], [0], [0], [1], [0, 0, 1, 1], [], []>} : vector<1x128xbf16>, vector<128x128xbf16>, vector<1x128xf32> -> vector<1x128xf32>
    %c1_142 = arith.constant 1 : index
    %c0_143 = arith.constant 0 : index
    %c0_144 = arith.constant 0 : index
    %155 = vector.load %arg17[%c1_142, %c0_143, %c0_144] : memref<3x1x2xbf16, #tpu.memory_space<vmem>>, vector<1x1x2xbf16>
    %156 = vector.shape_cast %155 : vector<1x1x2xbf16> to vector<1x2xbf16>
    %cst_145 = arith.constant dense<0.000000e+00> : vector<1x128xf32>
    %157 = tpu.matmul %156, %147, %cst_145 {dimension_numbers = #tpu.dot_dimension_numbers<[1], [0], [0], [1], [0, 0, 1, 1], [], []>} : vector<1x2xbf16>, vector<2x128xbf16>, vector<1x128xf32> -> vector<1x128xf32>
    %158 = arith.truncf %157 : vector<1x128xf32> to vector<1x128xbf16>
    %c1_146 = arith.constant 1 : index
    %c0_147 = arith.constant 0 : index
    %c0_148 = arith.constant 0 : index
    %159 = vector.load %arg18[%c1_146, %c0_147, %c0_148] : memref<3x128x128xbf16, #tpu.memory_space<vmem>>, vector<1x128x128xbf16>
    %160 = vector.shape_cast %159 : vector<1x128x128xbf16> to vector<128x128xbf16>
    %cst_149 = arith.constant dense<0.000000e+00> : vector<1x128xf32>
    %161 = tpu.matmul %158, %160, %cst_149 {dimension_numbers = #tpu.dot_dimension_numbers<[1], [0], [0], [1], [0, 0, 1, 1], [], []>} : vector<1x128xbf16>, vector<128x128xbf16>, vector<1x128xf32> -> vector<1x128xf32>
    %162 = arith.addf %154, %161 : vector<1x128xf32>
    %c2_150 = arith.constant 2 : index
    %c0_151 = arith.constant 0 : index
    %c0_152 = arith.constant 0 : index
    %163 = vector.load %arg17[%c2_150, %c0_151, %c0_152] : memref<3x1x2xbf16, #tpu.memory_space<vmem>>, vector<1x1x2xbf16>
    %164 = vector.shape_cast %163 : vector<1x1x2xbf16> to vector<1x2xbf16>
    %cst_153 = arith.constant dense<0.000000e+00> : vector<1x128xf32>
    %165 = tpu.matmul %164, %147, %cst_153 {dimension_numbers = #tpu.dot_dimension_numbers<[1], [0], [0], [1], [0, 0, 1, 1], [], []>} : vector<1x2xbf16>, vector<2x128xbf16>, vector<1x128xf32> -> vector<1x128xf32>
    %166 = arith.truncf %165 : vector<1x128xf32> to vector<1x128xbf16>
    %c2_154 = arith.constant 2 : index
    %c0_155 = arith.constant 0 : index
    %c0_156 = arith.constant 0 : index
    %167 = vector.load %arg18[%c2_154, %c0_155, %c0_156] : memref<3x128x128xbf16, #tpu.memory_space<vmem>>, vector<1x128x128xbf16>
    %168 = vector.shape_cast %167 : vector<1x128x128xbf16> to vector<128x128xbf16>
    %cst_157 = arith.constant dense<0.000000e+00> : vector<1x128xf32>
    %169 = tpu.matmul %166, %168, %cst_157 {dimension_numbers = #tpu.dot_dimension_numbers<[1], [0], [0], [1], [0, 0, 1, 1], [], []>} : vector<1x128xbf16>, vector<128x128xbf16>, vector<1x128xf32> -> vector<1x128xf32>
    %170 = arith.addf %162, %169 : vector<1x128xf32>
    %c0_158 = arith.constant 0 : index
    %c0_159 = arith.constant 0 : index
    %171 = vector.load %arg19[%c0_158, %c0_159] : memref<1x128xf32, #tpu.memory_space<vmem>>, vector<1x128xf32>
    %172 = arith.addf %170, %171 : vector<1x128xf32>
    %cst_160 = arith.constant 0.000000e+00 : f32
    %173 = vector.broadcast %cst_160 : f32 to vector<1x128xf32>
    %174 = arith.maximumf %172, %173 : vector<1x128xf32>
    %cst_161 = arith.constant dense<0.000000e+00> : vector<128xf32>
    %175 = vector.multi_reduction <add>, %174, %cst_161 [0] : vector<1x128xf32> to vector<128xf32>
    %176 = vector.shape_cast %175 : vector<128xf32> to vector<1x128xf32>
    %177 = arith.truncf %176 : vector<1x128xf32> to vector<1x128xbf16>
    %c0_162 = arith.constant 0 : index
    %c0_163 = arith.constant 0 : index
    %178 = vector.load %arg20[%c0_162, %c0_163] : memref<128x128xbf16, #tpu.memory_space<vmem>>, vector<128x128xbf16>
    %cst_164 = arith.constant dense<0.000000e+00> : vector<1x128xf32>
    %179 = tpu.matmul %177, %178, %cst_164 {dimension_numbers = #tpu.dot_dimension_numbers<[1], [0], [0], [1], [0, 0, 1, 1], [], []>} : vector<1x128xbf16>, vector<128x128xbf16>, vector<1x128xf32> -> vector<1x128xf32>
    %c0_165 = arith.constant 0 : index
    %c0_166 = arith.constant 0 : index
    %180 = vector.load %arg21[%c0_165, %c0_166] : memref<1x128xf32, #tpu.memory_space<vmem>>, vector<1x128xf32>
    %181 = arith.addf %179, %180 : vector<1x128xf32>
    %c0_167 = arith.constant 0 : index
    %c0_168 = arith.constant 0 : index
    %c0_169 = arith.constant 0 : index
    %182 = vector.load %arg22[%c0_167, %c0_168, %c0_169] : memref<1x1x128xf32, #tpu.memory_space<vmem>>, vector<1x1x128xf32>
    %183 = vector.shape_cast %182 : vector<1x1x128xf32> to vector<1x128xf32>
    %184 = vector.shape_cast %181 : vector<1x128xf32> to vector<1x1x128xf32>
    tpu.vector_store %arg22[%c0_167, %c0_168, %c0_169], %184 {strides = array<i32>} : memref<1x1x128xf32, #tpu.memory_space<vmem>>, vector<1x1x128xf32>,
    return
  }
  func.func @transform_0(%arg0: i32) -> (i32, i32, i32) {
    %c0_i32 = arith.constant 0 : i32
    %c0_i32_0 = arith.constant 0 : i32
    %c0_i32_1 = arith.constant 0 : i32
    return %arg0, %c0_i32, %c0_i32_0 : i32, i32, i32
  }
  func.func @transform_1(%arg0: i32) -> (i32, i32, i32) {
    %c0_i32 = arith.constant 0 : i32
    %c0_i32_0 = arith.constant 0 : i32
    %c0_i32_1 = arith.constant 0 : i32
    %c0_i32_2 = arith.constant 0 : i32
    return %c0_i32, %c0_i32_0, %c0_i32_1 : i32, i32, i32
  }
  func.func @transform_2(%arg0: i32) -> (i32, i32, i32) {
    %c0_i32 = arith.constant 0 : i32
    %c0_i32_0 = arith.constant 0 : i32
    %c0_i32_1 = arith.constant 0 : i32
    %c0_i32_2 = arith.constant 0 : i32
    return %c0_i32, %c0_i32_0, %c0_i32_1 : i32, i32, i32
  }
  func.func @transform_3(%arg0: i32) -> (i32, i32) {
    %c0_i32 = arith.constant 0 : i32
    %c0_i32_0 = arith.constant 0 : i32
    %c0_i32_1 = arith.constant 0 : i32
    return %c0_i32, %c0_i32_0 : i32, i32
  }
  func.func @transform_4(%arg0: i32) -> (i32, i32, i32) {
    %c0_i32 = arith.constant 0 : i32
    %c0_i32_0 = arith.constant 0 : i32
    %c0_i32_1 = arith.constant 0 : i32
    %c0_i32_2 = arith.constant 0 : i32
    return %c0_i32, %c0_i32_0, %c0_i32_1 : i32, i32, i32
  }
  func.func @transform_5(%arg0: i32) -> (i32, i32, i32) {
    %c0_i32 = arith.constant 0 : i32
    %c0_i32_0 = arith.constant 0 : i32
    %c0_i32_1 = arith.constant 0 : i32
    %c0_i32_2 = arith.constant 0 : i32
    return %c0_i32, %c0_i32_0, %c0_i32_1 : i32, i32, i32
  }
  func.func @transform_6(%arg0: i32) -> (i32, i32) {
    %c0_i32 = arith.constant 0 : i32
    %c0_i32_0 = arith.constant 0 : i32
    %c0_i32_1 = arith.constant 0 : i32
    return %c0_i32, %c0_i32_0 : i32, i32
  }
  func.func @transform_7(%arg0: i32) -> (i32, i32, i32) {
    %c0_i32 = arith.constant 0 : i32
    %c0_i32_0 = arith.constant 0 : i32
    %c0_i32_1 = arith.constant 0 : i32
    %c0_i32_2 = arith.constant 0 : i32
    return %c0_i32, %c0_i32_0, %c0_i32_1 : i32, i32, i32
  }
  func.func @transform_8(%arg0: i32) -> (i32, i32, i32) {
    %c0_i32 = arith.constant 0 : i32
    %c0_i32_0 = arith.constant 0 : i32
    %c0_i32_1 = arith.constant 0 : i32
    %c0_i32_2 = arith.constant 0 : i32
    return %c0_i32, %c0_i32_0, %c0_i32_1 : i32, i32, i32
  }
  func.func @transform_9(%arg0: i32) -> (i32, i32) {
    %c0_i32 = arith.constant 0 : i32
    %c0_i32_0 = arith.constant 0 : i32
    %c0_i32_1 = arith.constant 0 : i32
    return %c0_i32, %c0_i32_0 : i32, i32
  }
  func.func @transform_10(%arg0: i32) -> (i32, i32, i32) {
    %c0_i32 = arith.constant 0 : i32
    %c0_i32_0 = arith.constant 0 : i32
    %c0_i32_1 = arith.constant 0 : i32
    %c0_i32_2 = arith.constant 0 : i32
    return %c0_i32, %c0_i32_0, %c0_i32_1 : i32, i32, i32
  }
  func.func @transform_11(%arg0: i32) -> (i32, i32, i32) {
    %c0_i32 = arith.constant 0 : i32
    %c0_i32_0 = arith.constant 0 : i32
    %c0_i32_1 = arith.constant 0 : i32
    %c0_i32_2 = arith.constant 0 : i32
    return %c0_i32, %c0_i32_0, %c0_i32_1 : i32, i32, i32
  }
  func.func @transform_12(%arg0: i32) -> (i32, i32) {
    %c0_i32 = arith.constant 0 : i32
    %c0_i32_0 = arith.constant 0 : i32
    %c0_i32_1 = arith.constant 0 : i32
    return %c0_i32, %c0_i32_0 : i32, i32
  }
  func.func @transform_13(%arg0: i32) -> (i32, i32, i32) {
    %c0_i32 = arith.constant 0 : i32
    %c0_i32_0 = arith.constant 0 : i32
    %c0_i32_1 = arith.constant 0 : i32
    %c0_i32_2 = arith.constant 0 : i32
    return %c0_i32, %c0_i32_0, %c0_i32_1 : i32, i32, i32
  }
  func.func @transform_14(%arg0: i32) -> (i32, i32, i32) {
    %c0_i32 = arith.constant 0 : i32
    %c0_i32_0 = arith.constant 0 : i32
    %c0_i32_1 = arith.constant 0 : i32
    %c0_i32_2 = arith.constant 0 : i32
    return %c0_i32, %c0_i32_0, %c0_i32_1 : i32, i32, i32
  }
  func.func @transform_15(%arg0: i32) -> (i32, i32) {
    %c0_i32 = arith.constant 0 : i32
    %c0_i32_0 = arith.constant 0 : i32
    %c0_i32_1 = arith.constant 0 : i32
    return %c0_i32, %c0_i32_0 : i32, i32
  }
  func.func @transform_16(%arg0: i32) -> (i32, i32, i32) {
    %c0_i32 = arith.constant 0 : i32
    %c0_i32_0 = arith.constant 0 : i32
    %c0_i32_1 = arith.constant 0 : i32
    %c0_i32_2 = arith.constant 0 : i32
    return %c0_i32, %c0_i32_0, %c0_i32_1 : i32, i32, i32
  }
  func.func @transform_17(%arg0: i32) -> (i32, i32, i32) {
    %c0_i32 = arith.constant 0 : i32
    %c0_i32_0 = arith.constant 0 : i32
    %c0_i32_1 = arith.constant 0 : i32
    %c0_i32_2 = arith.constant 0 : i32
    return %c0_i32, %c0_i32_0, %c0_i32_1 : i32, i32, i32
  }
  func.func @transform_18(%arg0: i32) -> (i32, i32) {
    %c0_i32 = arith.constant 0 : i32
    %c0_i32_0 = arith.constant 0 : i32
    %c0_i32_1 = arith.constant 0 : i32
    return %c0_i32, %c0_i32_0 : i32, i32
  }
  func.func @transform_19(%arg0: i32) -> (i32, i32) {
    %c0_i32 = arith.constant 0 : i32
    %c0_i32_0 = arith.constant 0 : i32
    %c0_i32_1 = arith.constant 0 : i32
    return %c0_i32, %c0_i32_0 : i32, i32
  }
  func.func @transform_20(%arg0: i32) -> (i32, i32) {
    %c0_i32 = arith.constant 0 : i32
    %c0_i32_0 = arith.constant 0 : i32
    %c0_i32_1 = arith.constant 0 : i32
    return %c0_i32, %c0_i32_0 : i32, i32
  }
  func.func @transform_21(%arg0: i32) -> (i32, i32, i32) {
    %c0_i32 = arith.constant 0 : i32
    %c0_i32_0 = arith.constant 0 : i32
    %c0_i32_1 = arith.constant 0 : i32
    return %arg0, %c0_i32, %c0_i32_0 : i32, i32, i32
  }
}

</mosaic_0001>

<bundles_post_ra>
// kernel: forward.1
= control target key start
LH: loop header
LB: loop body
LE: loop exit
PB: predicated region body
PF: predicated region fallthrough
CT: control target
= control target key end

     0   :  { %s6621_s0 = inlined_call_operand.vmem [shape: f32[2,32,96], index: 0, kind: input, shape index: {}]   ;;  %s6622_s1 = inlined_call_operand.hbm [shape: bf16[3,16,32], index: 1, kind: input, shape index: {}]   ;;  %s6623_s2 = inlined_call_operand.hbm [shape: bf16[3,96,256], index: 2, kind: input, shape index: {}]   ;;  %s6624_s3 = inlined_call_operand.hbm [shape: f32[1,256], index: 3, kind: input, shape index: {}]   ;;  %s6625_s4 = inlined_call_operand.hbm [shape: bf16[3,8,16], index: 4, kind: input, shape index: {}]   ;;  %s6626_s5 = inlined_call_operand.vmem [shape: bf16[3,256,128], index: 5, kind: input, shape index: {}]   ;;  %s6627_s6 = inlined_call_operand.hbm [shape: f32[1,128], index: 6, kind: input, shape index: {}]   ;;  %s6628_s7 = inlined_call_operand.vmem [shape: bf16[3,8,8], index: 7, kind: input, shape index: {}]   ;;  %s6629_s8 = inlined_call_operand.hbm [shape: bf16[3,128,128], index: 8, kind: input, shape index: {}]   ;;  %s6630_s9 = inlined_call_operand.hbm [shape: f32[1,128], index: 9, kind: input, shape index: {}]   ;;  %s6631_s10 = inlined_call_operand.hbm [shape: bf16[3,4,8], index: 10, kind: input, shape index: {}]   ;;  %s6632_s11 = inlined_call_operand.hbm [shape: bf16[3,128,128], index: 11, kind: input, shape index: {}]   ;;  %s6633_s12 = inlined_call_operand.vmem [shape: f32[1,128], index: 12, kind: input, shape index: {}]   ;;  %s6634_s13 = inlined_call_operand.vmem [shape: bf16[3,2,4], index: 13, kind: input, shape index: {}]   ;;  %s6635_s14 = inlined_call_operand.hbm [shape: bf16[3,128,128], index: 14, kind: input, shape index: {}]   ;;  %s6636_s15 = inlined_call_operand.vmem [shape: f32[1,128], index: 15, kind: input, shape index: {}]   ;;  %s6637_s16 = inlined_call_operand.vmem [shape: bf16[3,1,2], index: 16, kind: input, shape index: {}]   ;;  %s6638_s17 = inlined_call_operand.vmem [shape: bf16[3,128,128], index: 17, kind: input, shape index: {}]   ;;  %s6639_s18 = inlined_call_operand.vmem [shape: f32[1,128], index: 18, kind: input, shape index: {}]   ;;  %s6640_s19 = inlined_call_operand.vmem [shape: bf16[128,128], index: 19, kind: input, shape index: {}]   ;;  %s6641_s20 = inlined_call_operand.vmem [shape: f32[1,128], index: 20, kind: input, shape index: {}]   ;;  %s6642_s21 = inlined_call_operand.hbm [shape: f32[2,1,128], index: 21, kind: output, shape index: {}]  }
   0x1   :  { %6658 = sst [smem:[#allocation34_spill]] %s6621_s0 }
   0x2   :  { %6659 = sst [smem:[#allocation35_spill]] %s6622_s1 }
   0x3   :  { %6660 = sst [smem:[#allocation36_spill]] %s6623_s2 }
   0x4   :  { %6661 = sst [smem:[#allocation37_spill]] %s6624_s3 }
   0x5   :  { %6662 = sst [smem:[#allocation38_spill]] %s6625_s4 }
   0x6   :  { %6663 = sst [smem:[#allocation39_spill]] %s6626_s5 }
   0x7   :  { %6664 = sst [smem:[#allocation40_spill]] %s6641_s20 }
   0x8   :  { %6665 = sst [smem:[#allocation41_spill]] %s6642_s21 }
   0x9   :  { %26 = vsyncpa [#allocation3], 0 }
   0xa   :  { %27 = vsyncpa [#allocation6], 0 }
   0xb   :  { %28 = vsyncpa [#allocation9], 0 }
   0xc   :  { %29 = vsyncpa [#allocation12], 0 }
   0xd   :  { %30 = vsyncpa [#allocation15], 0 }
   0xe   :  { %31 = vsyncpa [#allocation18], 0 }
   0xf   :  { %32 = vsyncpa [#allocation4], 0 }
  0x10   :  { %34 = vsyncpa [#allocation4 + $0x1], 0  ;;  %s5891_s2 = smov 0   ;;  %s5893_s25 = smov 0  }
  0x11   :  { %s5895_s26 = smov 0   ;;  %s5897_s27 = smov 0  }
  0x12 LB: > { %6666 = sst [smem:[#allocation27_spill]] %s5747_s2  ;;  %s5912_s3 = sadd.s32 4294967295, %s5759_s27   ;;  %s5759_s27 = sphi %s5897_s27, %s6706_s27   ;;  %s5755_s26 = sphi %s5895_s26, %s6708_s26   ;;  %s5751_s25 = sphi %s5893_s25, %s6710_s25   ;;  %s5747_s2 = sphi %s5891_s2, %s6709_s2  }
  0x13   : > { %6667 = sst [smem:[#allocation28_spill]] %s5755_s26  ;;  %s4137_s28 = sadd.s32 4294967294, %s5759_s27  }
  0x14   : > { %6668 = sst [smem:[#allocation29_spill]] %s5759_s27  ;;  %s5916_s29 = sadd.s32 1, %s5759_s27  }
  0x15   : > { %6669 = sst [smem:[#allocation30_spill]] %s5916_s29  ;;  %s493_s0 = sadd.s32 1, %s5755_s26 }
  0x16   : > { %s490_s4 = ssub.s32 %s5759_s27, %s5916_s29  ;;  %p503_p0 = scmp.ne.s32.totalorder %s5755_s26, %s5751_s25 }
  0x17   : > { %p491_p1 = scmp.eq.s32.totalorder %s490_s4, 0  ;;  %p504_p2 = scmp.eq.s32.totalorder %s5912_s3, 1 }
  0x18   : > { %p509_p3 = scmp.ne.s32.totalorder %s5751_s25, %s5747_s2  ;;  %p510_p4 = scmp.eq.s32.totalorder %s4137_s28, 1 }
  0x19   : > { %s5927_s30 = scalar_select %p491_p1, %s5755_s26, %s493_s0  }
  0x1a   : > { %p5929_p5 = por %p504_p2, %p503_p0  ;;  %p5933_p6 = por %p510_p4, %p509_p3 }
  0x1b   : > { %6670 = sst [smem:[#allocation31_spill]] %s5927_s30  ;;  %p4138_p7 = scmp.ge.s32.totalorder %s5759_s27, 1 }
  0x1c   : > { %s6671_s5 = scalar_select %p5929_p5, 1, 0 }
  0x1d   : > { %s6673_s22 = scalar_select %p5933_p6, 1, 0 }
  0x1e   : > { %6672 = sst [smem:[#allocation32_spill]] %s6671_s5  ;;  %p517_p8 = scmp.lt.s32.totalorder %s5759_s27, 3 }
  0x1f   : > { %6674 = sst [smem:[#allocation33_spill]] %s6673_s22  ;;  %p6655_p9 = scmp.eq.s32.totalorder %s5912_s3, 0 }
  0x20   : > { %p5940_p10 = pnand %p4138_p7, %p517_p8  ;;  %s5761_s1 = smov [#allocation5]  }
  0x21   : > { %s542_s24 = sshll.u32 %s5761_s1, 4  ;;  %s5762_s0 = smov [#allocation8]   ;;  %s543_s24 = int_to_ptr.vmem [resolvable:$true] %s542_s24 }
  0x22   : > { %s6675_s23 = scalar_select %p5940_p10, 1, 0 }
  0x23   : > { %p5099_p11 = pneg %p5940_p10  ;;  %s566_s4 = sshll.u32 %s5762_s0, 4  ;;  %s567_s4 = int_to_ptr.vmem [resolvable:$true] %s566_s4 }
  0x24   : > { %s5426_s26 = scalar_lea.vmem %s543_s24, 4608  ;;  %p5434_p3 = scmp.lt.s32.totalorder %s543_s24, %s543_s24 }
  0x25   : > { %p5948_p12 = pnand %p6655_p9, %p5099_p11  ;;  %p5427_p0 = scmp.ne.s32.totalorder %s543_s24, %s5426_s26 }
  0x26   : > { %p5435_p4 = scmp.lt.s32.totalorder %s5426_s26, %s5426_s26 }
  0x27   : > { %p5954_p13 = pneg %p5948_p12 }
  0x28   : > { %p5436_p7 = por %p5435_p4, %p5434_p3 }
  0x29   : > { %p5429_p1 = pnand %p5427_p0, %p5954_p13 }
  0x2b   : > { %p5430_p2 = pneg %p5429_p1 }
  0x2d   : > { %p5437_p8 = pnand %p5436_p7, %p5430_p2 }
  0x2f   : > { %5440 = shalt.err (!%p5437_p8)
}
  0x30   : > { %s5763_s1 = smov 128   ;;  %s5764_s0 = smov 8  }
  0x31   : > { %s6678_s2 = sld [smem:[#allocation36_spill]]  ;;  %s5765_s27 = smov [#allocation11]  }
  0x32   : > { %s596_s21 = sshll.u32 %s5765_s27, 4  ;;  %s5452_s20 = scalar_lea.vmem %s567_s4, 192  ;;  %s597_s21 = int_to_ptr.vmem [resolvable:$true] %s596_s21 }
  0x33   : > { %p5453_p11 = scmp.ne.s32.totalorder %s567_s4, %s5452_s20  ;;  %p5460_p3 = scmp.lt.s32.totalorder %s567_s4, %s567_s4 }
  0x34   : > { %p5461_p2 = scmp.lt.s32.totalorder %s5452_s20, %s5452_s20 }
  0x35   : > { %p5455_p0 = pnand %p5453_p11, %p5954_p13 }
  0x36   : > { %p5462_p4 = por %p5461_p2, %p5460_p3 }
  0x37   : > { %5105 = dma.hbm_to_vmem [thread:$0]  (!%p5948_p12), %s6678_s2, 4608, %s543_s24, [#allocation6], %s5763_s1, %s5763_s1, %s5764_s0  }
  0x38   : > { %p5456_p1 = pneg %p5455_p0 }
  0x3a   : > { %p5463_p7 = pnand %p5462_p4, %p5456_p1 }
  0x3c   : > { %5466 = shalt.err (!%p5463_p7)
}
  0x3d   : > { %s6653_s26 = smov 64   ;;  %s5767_s5 = smov 4  }
  0x3e   : > { %s6679_s29 = sld [smem:[#allocation38_spill]]  ;;  %s5478_s22 = scalar_lea.vmem %s597_s21, 3072 }
  0x3f   : > { %p5479_p8 = scmp.ne.s32.totalorder %s597_s21, %s5478_s22  ;;  %p5486_p1 = scmp.lt.s32.totalorder %s597_s21, %s597_s21 }
  0x40   : > { %p5487_p3 = scmp.lt.s32.totalorder %s5478_s22, %s5478_s22 }
  0x41   : > { %p5481_p11 = pnand %p5479_p8, %p5954_p13 }
  0x42   : > { %p5488_p2 = por %p5487_p3, %p5486_p1 }
  0x43   : > { %p5482_p0 = pneg %p5481_p11 }
  0x44   : > { %5111 = dma.hbm_to_vmem [thread:$0]  (!%p5948_p12), %s6679_s29, 192, %s567_s4, [#allocation9], %s6653_s26, %s6653_s26, %s5767_s5  }
  0x45   : > { %p5489_p4 = pnand %p5488_p2, %p5482_p0 }
  0x47   : > { %5492 = shalt.err (!%p5489_p4)
}
  0x48   : > { %5117 = dma.hbm_to_vmem [thread:$0]  (!%p5948_p12), %s6629_s8, 3072, %s597_s21, [#allocation12], %s6653_s26, %s6653_s26, %s5767_s5  }
  0x49   : > { %s5768_s4 = smov [#allocation14]  }
  0x4a   : > { %s620_s1 = sshll.u32 %s5768_s4, 4  ;;  %s621_s1 = int_to_ptr.vmem [resolvable:$true] %s620_s1 }
  0x4b   : > { %s5504_s0 = scalar_lea.vmem %s621_s1, 96  ;;  %p5512_p0 = scmp.lt.s32.totalorder %s621_s1, %s621_s1 }
  0x4c   : > { %p5505_p7 = scmp.ne.s32.totalorder %s621_s1, %s5504_s0  ;;  %p5513_p1 = scmp.lt.s32.totalorder %s5504_s0, %s5504_s0 }
  0x4e   : > { %p5507_p8 = pnand %p5505_p7, %p5954_p13  ;;  %p5514_p3 = por %p5513_p1, %p5512_p0 }
  0x50   : > { %p5508_p11 = pneg %p5507_p8 }
  0x52   : > { %p5515_p2 = pnand %p5514_p3, %p5508_p11 }
  0x54   : > { %5518 = shalt.err (!%p5515_p2)
}
  0x55   : > { %s5769_s2 = smov 32   ;;  %s5770_s27 = smov 2  }
  0x56   : > { %5123 = dma.hbm_to_vmem [thread:$0]  (!%p5948_p12), %s6631_s10, 96, %s621_s1, [#allocation15], %s5769_s2, %s5769_s2, %s5770_s27  }
  0x57   : > { %s5771_s22 = smov [#allocation2]   ;;  %s5772_s24 = smov [#allocation7]  }
  0x58   : > { %s529_s20 = sshll.u32 %s5771_s22, 4  ;;  %s556_s4 = sshll.u32 %s5772_s24, 4  ;;  %s530_s20 = int_to_ptr.vmem [resolvable:$true] %s529_s20  ;;  %s557_s4 = int_to_ptr.vmem [resolvable:$true] %s556_s4 }
  0x59   : > { %s5530_s26 = scalar_lea.vmem %s530_s20, 384  ;;  %p5538_p11 = scmp.lt.s32.totalorder %s530_s20, %s530_s20 }
  0x5a   : > { %p5531_p4 = scmp.ne.s32.totalorder %s530_s20, %s5530_s26  ;;  %p5539_p0 = scmp.lt.s32.totalorder %s5530_s26, %s5530_s26 }
  0x5c   : > { %p5533_p7 = pnand %p5531_p4, %p5954_p13  ;;  %p5540_p1 = por %p5539_p0, %p5538_p11 }
  0x5e   : > { %p5534_p8 = pneg %p5533_p7 }
  0x60   : > { %p5541_p3 = pnand %p5540_p1, %p5534_p8 }
  0x62   : > { %5544 = shalt.err (!%p5541_p3)
}
  0x63   : > { %s6680_s1 = smov 64   ;;  %s6681_s27 = sld [smem:[#allocation35_spill]] }
  0x64   : > { %s5556_s29 = scalar_lea.vmem %s557_s4, 32  ;;  %p5564_p9 = scmp.lt.s32.totalorder %s557_s4, %s557_s4 }
  0x65   : > { %p5557_p2 = scmp.ne.s32.totalorder %s557_s4, %s5556_s29  ;;  %p5565_p6 = scmp.lt.s32.totalorder %s5556_s29, %s5556_s29 }
  0x67   : > { %p5559_p4 = pnand %p5557_p2, %p5954_p13  ;;  %p5566_p11 = por %p5565_p6, %p5564_p9 }
  0x69   : > { %5102 = dma.hbm_to_vmem [thread:$0]  (!%p5948_p12), %s6681_s27, 384, %s530_s20, [#allocation3], %s6680_s1, %s6680_s1, %s5767_s5  }
  0x6a   : > { %p5560_p7 = pneg %p5559_p4 }
  0x6c   : > { %p5567_p8 = pnand %p5566_p11, %p5560_p7 }
  0x6e   : > { %5570 = shalt.err (!%p5567_p8)
}
  0x6f   : > { %s6682_s22 = sld [smem:[#allocation37_spill]]  ;;  %s5773_s24 = smov [#allocation10]  }
  0x70   : > { %s583_s0 = sshll.u32 %s5773_s24, 4  ;;  %s5774_s20 = smov [#allocation13]   ;;  %s584_s0 = int_to_ptr.vmem [resolvable:$true] %s583_s0 }
  0x71   : > { %s610_s2 = sshll.u32 %s5774_s20, 4  ;;  %s5582_s27 = scalar_lea.vmem %s584_s0, 16  ;;  %s611_s2 = int_to_ptr.vmem [resolvable:$true] %s610_s2 }
  0x72   : > { %p5583_p0 = scmp.ne.s32.totalorder %s584_s0, %s5582_s27  ;;  %s5589_s29 = scalar_lea.vmem %s584_s0, 32 }
  0x73   : > { %p5590_p9 = scmp.lt.s32.totalorder %s584_s0, %s584_s0  ;;  %p5591_p3 = scmp.lt.s32.totalorder %s5589_s29, %s5582_s27 }
  0x74   : > { %p5585_p1 = pnand %p5583_p0, %p5954_p13 }
  0x75   : > { %5108 = dma.hbm_to_vmem [thread:$0]  (!%p5948_p12), %s6682_s22, 32, %s557_s4, [#allocation6]  }
  0x76   : > { %p5586_p6 = pneg %p5585_p1  ;;  %p5592_p2 = por %p5591_p3, %p5590_p9 }
  0x78   : > { %p5593_p4 = pnand %p5592_p2, %p5586_p6 }
  0x7a   : > { %5596 = shalt.err (!%p5593_p4)
}
  0x7b   : > { %5114 = dma.hbm_to_vmem [thread:$0]  (!%p5948_p12), %s6627_s6, 16, %s584_s0, [#allocation9]  }
  0x7c   : > { %s5608_s21 = scalar_lea.vmem %s611_s2, 16  ;;  %s5615_s22 = scalar_lea.vmem %s611_s2, 32 }
  0x7d   : > { %p5609_p7 = scmp.ne.s32.totalorder %s611_s2, %s5608_s21  ;;  %p5616_p0 = scmp.lt.s32.totalorder %s611_s2, %s611_s2 }
  0x7e   : > { %p5617_p1 = scmp.lt.s32.totalorder %s5615_s22, %s5608_s21 }
  0x7f   : > { %p5611_p11 = pnand %p5609_p7, %p5954_p13 }
  0x80   : > { %p5618_p5 = por %p5617_p1, %p5616_p0 }
  0x81   : > { %p5612_p8 = pneg %p5611_p11 }
  0x83   : > { %p5619_p10 = pnand %p5618_p5, %p5612_p8 }
  0x85   : > { %5622 = shalt.err (!%p5619_p10)
}
  0x86   : > { %5120 = dma.hbm_to_vmem [thread:$0]  (!%p5948_p12), %s6630_s9, 16, %s611_s2, [#allocation12]  }
  0x87   : > { %s5775_s27 = smov [#allocation16]   ;;  %s5776_s29 = smov [#allocation17]  }
  0x88   : > { %s633_s0 = sshll.u32 %s5775_s27, 4  ;;  %s652_s4 = sshll.u32 %s5776_s29, 4  ;;  %s634_s0 = int_to_ptr.vmem [resolvable:$true] %s633_s0  ;;  %s653_s4 = int_to_ptr.vmem [resolvable:$true] %s652_s4 }
  0x89   : > { %s5634_s26 = scalar_lea.vmem %s634_s0, 3072  ;;  %p5642_p5 = scmp.lt.s32.totalorder %s634_s0, %s634_s0 }
  0x8a   : > { %p5635_p6 = scmp.ne.s32.totalorder %s634_s0, %s5634_s26  ;;  %p5643_p10 = scmp.lt.s32.totalorder %s5634_s26, %s5634_s26 }
  0x8c   : > { %p5637_p9 = pnand %p5635_p6, %p5954_p13  ;;  %p5644_p2 = por %p5643_p10, %p5642_p5 }
  0x8e   : > { %p5638_p3 = pneg %p5637_p9 }
  0x90   : > { %p5645_p4 = pnand %p5644_p2, %p5638_p3 }
  0x92   : > { %5648 = shalt.err (!%p5645_p4)
}
  0x93   : > { %5126 = dma.hbm_to_vmem [thread:$0]  (!%p5948_p12), %s6632_s11, 3072, %s634_s0, [#allocation15], %s6680_s1, %s6680_s1, %s5767_s5  }
  0x94   : > { %s5660_s22 = scalar_lea.vmem %s653_s4, 3072  ;;  %p5668_p0 = scmp.lt.s32.totalorder %s653_s4, %s653_s4 }
  0x95   : > { %p5661_p7 = scmp.ne.s32.totalorder %s653_s4, %s5660_s22  ;;  %p5669_p1 = scmp.lt.s32.totalorder %s5660_s22, %s5660_s22 }
  0x97   : > { %p5663_p11 = pnand %p5661_p7, %p5954_p13  ;;  %p5670_p6 = por %p5669_p1, %p5668_p0 }
  0x99   : > { %p5664_p8 = pneg %p5663_p11 }
  0x9b   : > { %p5671_p9 = pnand %p5670_p6, %p5664_p8 }
  0x9d   : > { %5674 = shalt.err (!%p5671_p9)
}
  0x9e   : > { %5129 = dma.hbm_to_vmem [thread:$0]  (!%p5948_p12), %s6635_s14, 3072, %s653_s4, [#allocation18], %s6680_s1, %s6680_s1, %s5767_s5  }
  0x9f   : > { %p6683_p3 = scmp.ne.s32.totalorder %s6675_s23, 0 }
  0xa0   : > { %p6684_p13 = scmp.eq.s32.totalorder (!%p6683_p3), %s5912_s3, 0 }
  0xa1   : > { %694 = sbr.rel (%p6683_p3) target bundleno = 4087 (0xff7), region = 104 }
  0xa6   : > { %5718 = dma.done.wait (%p6684_p13), [#allocation3], 384   ;;  %p6685_p5 = pmov %p6684_p13 }
  0xa8   : > { %5720 = vsyncadd (%p6685_p5), [#allocation3], 4294966912  ;;  %p6686_p10 = pmov %p6685_p5 }
  0xa9   : > { %p6687_p2 = pmov %p6685_p5 }
  0xaa   : > { %5722 = dma.done.wait (%p6686_p10), [#allocation6], 4640  }
  0xab   : > { %5724 = vsyncadd (%p6687_p2), [#allocation6], 4294962656  ;;  %p6688_p4 = pmov %p6687_p2 }
  0xac   : > { %p6689_p12 = pmov %p6687_p2 }
  0xad   : > { %5726 = dma.done.wait (%p6688_p4), [#allocation9], 208  }
  0xae   : > { %5728 = vsyncadd (%p6689_p12), [#allocation9], 4294967088  ;;  %p6690_p7 = pmov %p6687_p2 }
  0xaf   : > { %p6691_p11 = pmov %p6687_p2 }
  0xb0   : > { %5730 = dma.done.wait (%p6690_p7), [#allocation12], 3088  }
  0xb1   : > { %5732 = vsyncadd (%p6691_p11), [#allocation12], 4294964208  ;;  %p6692_p8 = pmov %p6687_p2 }
  0xb2   : > { %p6693_p0 = pmov %p6687_p2 }
  0xb3   : > { %5734 = dma.done.wait (%p6692_p8), [#allocation15], 3168  }
  0xb4   : > { %5736 = vsyncadd (%p6693_p0), [#allocation15], 4294964128  ;;  %p6694_p1 = pmov %p6693_p0 }
  0xb5   : > { %p6695_p6 = pmov %p6693_p0 }
  0xb6   : > { %5738 = dma.done.wait (%p6694_p1), [#allocation18], 3072  }
  0xb7   : > { %5740 = vsyncadd (%p6695_p6), [#allocation18], 4294964224  ;;  %p789_p9 = scmp.lt.s32.totalorder %s5912_s3, 1  ;;  %v5777_v0 = vmov 0.0   ;;  %vm5778_vm0 = vmmov 0   ;;  %s6696_s1 = sld [smem:[#allocation34_spill]] }
  0xb8   : > { %4701 = vmatprep.subr.bf16.mxu0 %v5777_v0  ;;  %4709 = vmatprep.subr.bf16.mxu1 %v5777_v0  ;;  %v5206_v7 = vld [vmem:[#allocation2] sm:$0xff]   ;;  %v5210_v8 = vld [vmem:[#allocation5 + $0xb4] ss:$8 sps:$4 sm:$0xff]   ;;  %v5208_v11 = vld [vmem:[#allocation5 + $0xb0] ss:$8 sps:$4 sm:$0xff]   ;;  %vm808_vm1 = vcmask 261120  }
  0xb9   : > { %s790_s30 = scalar_select %p789_p9, %s5912_s3, 1  ;;  %4705 = vmatprep.mubr.msk.bf16.mxu0 %vm5778_vm0, %v5777_v0  ;;  %4713 = vmatprep.mubr.msk.bf16.mxu1 %vm5778_vm0, %v5777_v0  ;;  %v5207_v9 = vld [vmem:[#allocation2 + $0x8] sm:$0xff]   ;;  %v5216_v13 = vld [vmem:[#allocation5 + $0xa4] ss:$8 sps:$4 sm:$0xff]   ;;  %v5214_v15 = vld [vmem:[#allocation5 + $0xa0] ss:$8 sps:$4 sm:$0xff]  }
  0xba   : > { %v5213_v10 = vld [vmem:[#allocation5 + $0x54] ss:$8 sps:$4 sm:$0xff]   ;;  %v5211_v12 = vld [vmem:[#allocation5 + $0x50] ss:$8 sps:$4 sm:$0xff]   ;;  %v5219_v14 = vld [vmem:[#allocation5 + $0x44] ss:$8 sps:$4 sm:$0xff]  }
  0xbb   : > { %s4484_s5 = sshll.u32 %s790_s30, 5  ;;  %v5217_v16 = vld [vmem:[#allocation5 + $0x40] ss:$8 sps:$4 sm:$0xff]   ;;  %v5222_v17 = vld [vmem:[#allocation5 + $0x94] ss:$8 sps:$4 sm:$0xff]   ;;  %v5779_v33 = vmov 0  }
  0xbc   : > { %v5225_v18 = vld [vmem:[#allocation5 + $0x34] ss:$8 sps:$4 sm:$0xff]   ;;  %v5220_v19 = vld [vmem:[#allocation5 + $0x90] ss:$8 sps:$4 sm:$0xff]   ;;  %v5228_v21 = vld [vmem:[#allocation5 + $0x84] ss:$8 sps:$4 sm:$0xff]  }
  0xbd   : > { %s793_s27 = scalar_lea.vmem %s6696_s1, %s4484_s5  ;;  %v5223_v20 = vld [vmem:[#allocation5 + $0x30] ss:$8 sps:$4 sm:$0xff]   ;;  %v5231_v22 = vld [vmem:[#allocation5 + $0x24] ss:$8 sps:$4 sm:$0xff]   ;;  %v5226_v23 = vld [vmem:[#allocation5 + $0x80] ss:$8 sps:$4 sm:$0xff]  }
  0xbe   : > { %v797_v1 = vld [vmem:[%s793_s27 + $0x10] sm:$0xff]  ;;  %v798_v2 = vld [vmem:[%s793_s27 + $0x18] sm:$0xff]  ;;  %v795_v3 = vld [vmem:[%s793_s27] sm:$0xff]  ;;  %vm992_vm2 = vcmask 785408   ;;  %s6697_s4 = sld [smem:[#allocation39_spill]]  ;;  %vm1344_vm3 = vcmask 130048  }
  0xbf   : > { %v6080_v4 = vpack.c.bf16 %v798_v2, %v797_v1  ;;  %v796_v5 = vld [vmem:[%s793_s27 + $0x8] sm:$0xff]  ;;  %v5229_v24 = vld [vmem:[#allocation5 + $0x20] ss:$8 sps:$4 sm:$0xff]   ;;  %v5240_v29 = vld [vmem:[#allocation5 + $0x64] ss:$8 sps:$4 sm:$0xff]   ;;  %vm2009_vm4 = vcmask 1043456  }
  0xc0   : > { %v6084_v6 = vpack.c.bf16 %v796_v5, %v795_v3  ;;  %v5234_v25 = vld [vmem:[#allocation5 + $0x74] ss:$8 sps:$4 sm:$0xff]   ;;  %v5232_v27 = vld [vmem:[#allocation5 + $0x70] ss:$8 sps:$4 sm:$0xff]   ;;  %v5243_v30 = vld [vmem:[#allocation5 + $0x4] ss:$8 sps:$4 sm:$0xff]  }
  0xc1   : > { %4702 = vmatpush3.bf16.msra.mxu0 %v6080_v4  ;;  %4710 = vmatpush3.bf16.msra.mxu1 %v6080_v4  ;;  %v5237_v26 = vld [vmem:[#allocation5 + $0x14] ss:$8 sps:$4 sm:$0xff]   ;;  %v5235_v28 = vld [vmem:[#allocation5 + $0x10] ss:$8 sps:$4 sm:$0xff]   ;;  %v5238_v31 = vld [vmem:[#allocation5 + $0x60] ss:$8 sps:$4 sm:$0xff]  }
  0xc2   : > { %4703 = vmatprep.subr.bf16.mxu0 %v5777_v0  ;;  %4711 = vmatprep.subr.bf16.mxu1 %v5777_v0  ;;  %v5241_v32 = vld [vmem:[#allocation5] ss:$8 sps:$4 sm:$0xff]   ;;  %v5247_v34 = vld [vmem:[#allocation5 + $0x114] ss:$8 sps:$4 sm:$0xff]   ;;  %v5245_v43 = vld [vmem:[#allocation5 + $0x110] ss:$8 sps:$4 sm:$0xff]  }
  0xc3   : > { %v5250_v46 = vld [vmem:[#allocation5 + $0x104] ss:$8 sps:$4 sm:$0xff]   ;;  %v5248_v47 = vld [vmem:[#allocation5 + $0x100] ss:$8 sps:$4 sm:$0xff]   ;;  %v5253_v48 = vld [vmem:[#allocation5 + $0xf4] ss:$8 sps:$4 sm:$0xff]  }
  0xc4   : > { %v5244_v49 = vld [vmem:[#allocation2 + $0x10] sm:$0xff]   ;;  %v5256_v51 = vld [vmem:[#allocation5 + $0xe4] ss:$8 sps:$4 sm:$0xff]   ;;  %v5254_v52 = vld [vmem:[#allocation5 + $0xe0] ss:$8 sps:$4 sm:$0xff]   ;;  %vm2005_vm5 = vcmask 64512  }
  0xc5   : > { %4704 = vmatpush3.bf16.msra.mxu0 %v6084_v6  ;;  %4712 = vmatpush3.bf16.msra.mxu1 %v6084_v6  ;;  %v5251_v50 = vld [vmem:[#allocation5 + $0xf0] ss:$8 sps:$4 sm:$0xff]   ;;  %v5259_v53 = vld [vmem:[#allocation5 + $0xd4] ss:$8 sps:$4 sm:$0xff]   ;;  %v5262_v55 = vld [vmem:[#allocation5 + $0xc4] ss:$8 sps:$4 sm:$0xff]  }
  0xc6   : > { %1000 = vmatprep.subr.bf16.mxu0 %v5210_v8  ;;  %1106 = vmatprep.subr.bf16.mxu1 %v5213_v10  ;;  %v5257_v54 = vld [vmem:[#allocation5 + $0xd0] ss:$8 sps:$4 sm:$0xff]   ;;  %v5260_v56 = vld [vmem:[#allocation5 + $0xc0] ss:$8 sps:$4 sm:$0xff]   ;;  %vm2941_vm6 = vcmask 1041408   ;;  %vm2937_vm7 = vcmask 31744  }
  0xc7   : > { %v5279_v3 = vld [vmem:[%s6697_s4 + $0x78] sm:$0xff]   ;;  %v5281_v5 = vld [vmem:[%s6697_s4 + $0x70] sm:$0xff]   ;;  %v5284_v8 = vld [vmem:[%s6697_s4 + $0x28] sm:$0xff]   ;;  %vm3408_vm8 = vcmask 1040384   ;;  %vm3404_vm9 = vcmask 15360   ;;  %s6698_s26 = sld [smem:[#allocation32_spill]] }
  0xc8   : > { %4706 = vmatmul.mubr.msk.bf16.vlgmr.msra.gmra.mxu0 %vm808_vm1, %v5206_v7  ;;  %4714 = vmatmul.mubr.msk.bf16.vlgmr.msra.gmra.mxu1 %vm808_vm1, %v5207_v9  ;;  %v5283_v7 = vld [vmem:[%s6697_s4 + $0x68] sm:$0xff]   ;;  %v5285_v9 = vld [vmem:[%s6697_s4 + $0x60] sm:$0xff]   ;;  %s787_s2 = sand.u32 1, %s5751_s25   ;;  %s6699_s24 = sld [smem:[#allocation40_spill]] }
  0xc9   : > { %1001 = vmatpush1.bf16.msra.mxu0 %v5208_v11  ;;  %1107 = vmatpush1.bf16.msra.mxu1 %v5211_v12  ;;  %v5286_v10 = vld [vmem:[%s6697_s4 + $0x20] sm:$0xff]   ;;  %v5287_v11 = vld [vmem:[%s6697_s4 + $0x58] sm:$0xff]   ;;  %s4481_s20 = sshll.u32 %s5912_s3, 4  ;;  %s788_s30 = scalar_lea.vmem [#allocation19], %s787_s2 }
  0xca   : > { %1002 = vmatprep.subr.bf16.mxu0 %v5216_v13  ;;  %1108 = vmatprep.subr.bf16.mxu1 %v5219_v14  ;;  %v5288_v12 = vld [vmem:[%s6697_s4 + $0x18] sm:$0xff]   ;;  %v5289_v13 = vld [vmem:[%s6697_s4 + $0x50] sm:$0xff]   ;;  %s3984_s5 = sshll.u32 %s788_s30, 4  ;;  %s6700_s1 = sld [smem:[#allocation41_spill]]  ;;  %s6582_s5 = int_to_ptr.vmem [resolvable:$true] %s3984_s5 }
  0xcb   : > { %1028 = vmatprep.mubr.bf16.mxu0 %v5779_v33  ;;  %1134 = vmatprep.mubr.bf16.mxu1 %v5779_v33  ;;  %v5290_v14 = vld [vmem:[%s6697_s4 + $0x10] sm:$0xff]   ;;  %s3972_s0 = scalar_lea.sflag [#allocation4], %s787_s2  ;;  %s5675_s29 = scalar_lea.vmem %s6582_s5, 16 }
  0xcc   : > { %p5676_p3 = scmp.ne.s32.totalorder %s6582_s5, %s5675_s29  ;;  %s5780_s3 = smov [#allocation19]  }
  0xcd   : > { %1003 = vmatpush1.bf16.msra.mxu0 %v5214_v15  ;;  %1109 = vmatpush1.bf16.msra.mxu1 %v5217_v16  ;;  %v5291_v15 = vld [vmem:[%s6697_s4 + $0x48] sm:$0xff]   ;;  %p6701_p13 = scmp.ne.s32.totalorder %s6698_s26, 0  ;;  %s5679_s21 = sshll.u32 %s5780_s3, 4  ;;  %s5680_s21 = int_to_ptr.vmem [resolvable:$false] %s5679_s21 }
  0xce   : > { %1004 = vmatprep.subr.bf16.mxu0 %v5222_v17  ;;  %1110 = vmatprep.subr.bf16.mxu1 %v5225_v18  ;;  %v5292_v16 = vld [vmem:[%s6697_s4 + $0x8] sm:$0xff]   ;;  %v1323_v18 = vlaneseq  ;;  %s5681_s22 = scalar_lea.vmem %s5680_s21, 32  ;;  %p5682_p2 = scmp.lt.s32.totalorder %s6582_s5, %s5680_s21 }
  0xcf   : > { %p5677_p5 = pnand %p5676_p3, %p6701_p13  ;;  %p5683_p4 = scmp.lt.s32.totalorder %s5681_s22, %s5675_s29 }
  0xd0   : > { %s6580_s27 = scalar_lea.hbm %s6700_s1, %s4481_s20 }
  0xd1   : > { %1005 = vmatpush1.bf16.msra.mxu0 %v5220_v19  ;;  %1111 = vmatpush1.bf16.msra.mxu1 %v5223_v20  ;;  %v1324_v20 = vshrl.u32 %v1323_v18, 7  ;;  %p5678_p10 = pneg %p5677_p5  ;;  %p5684_p12 = por %p5683_p4, %p5682_p2 }
  0xd2   : > { %1006 = vmatprep.subr.bf16.mxu0 %v5228_v21  ;;  %1112 = vmatprep.subr.bf16.mxu1 %v5231_v22 }
  0xd3   : > { %v1325_v22 = vsub.s32 0, %v1324_v20  ;;  %p5685_p7 = pnand %p5684_p12, %p5678_p10 }
  0xd5   : > { %1007 = vmatpush1.bf16.msra.mxu0 %v5226_v23  ;;  %1113 = vmatpush1.bf16.msra.mxu1 %v5229_v24  ;;  %v1321_v24 = vld [vmem:[#allocation7] sm:$0x3] }
  0xd6   : > { %1008 = vmatprep.subr.bf16.mxu0 %v5234_v25  ;;  %1114 = vmatprep.subr.bf16.mxu1 %v5237_v26  ;;  %v1329_v26 = vsub.s32 1, %v1324_v20 }
  0xd9   : > { %1009 = vmatpush1.bf16.msra.mxu0 %v5232_v27  ;;  %1115 = vmatpush1.bf16.msra.mxu1 %v5235_v28 }
  0xda   : > { %1010 = vmatprep.subr.bf16.mxu0 %v5240_v29  ;;  %1116 = vmatprep.subr.bf16.mxu1 %v5243_v30  ;;  %v1326_v30 = vrot.slane %v1321_v24, %v1325_v22 }
  0xdd   : > { %1011 = vmatpush1.bf16.msra.mxu0 %v5238_v31  ;;  %1117 = vmatpush1.bf16.msra.mxu1 %v5241_v32 }
  0xde   : > { %4717 = vmatprep.subr.bf16.mxu0 %v5777_v0  ;;  %1278 = vmatprep.subr.bf16.mxu1 %v5247_v34 }
 0x188   : > { %v846_v35 = vpop.f32.mrf.mxu0  ;;  %v911_v36 = vpop.f32.mrf.mxu1 }
 0x18a   : > { %v4707_v37 = vpop.f32.mrf.mxu0  ;;  %v4715_v38 = vpop.f32.mrf.mxu1 }
 0x18c   : > { %v849_v39 = vpop.f32.mrf.mxu0  ;;  %v914_v40 = vpop.f32.mrf.mxu1 }
 0x18d   : > { %v853_v41 = vpack.c.bf16 %v849_v39, %v846_v35  ;;  %v918_v42 = vpack.c.bf16 %v914_v40, %v911_v36  ;;  %v1330_v35 = vrot.slane %v1321_v24, %v1329_v26  ;;  %v5300_v24 = vld [vmem:[%s6697_s4 + $0x128] sm:$0xff]   ;;  %v1777_v26 = vld [vmem:[#allocation8 + $0x8] sm:$0xf] }
 0x18e   : > { %v4716_v44 = vpop.f32.mrf.mxu1  ;;  %v4708_v45 = vpop.f32.mrf.mxu0 }
 0x18f   : > { %4179 = vmatmul.mubr.msk.bf16.vlgmr.msra.gmra.mxu0 %vm992_vm2, %v918_v42  ;;  %4192 = vmatmul.mubr.msk.bf16.vlgmr.msra.gmra.mxu1 %vm992_vm2, %v853_v41 }
 0x190   : > { %4718 = vmatpush3.bf16.msra.mxu0 %v6080_v4  ;;  %4721 = vmatprep.mubr.msk.bf16.mxu0 %vm5778_vm0, %v5777_v0  ;;  %v5280_v4 = vld [vmem:[%s6697_s4 + $0x38] sm:$0xff]  }
 0x191   : > { %4719 = vmatprep.subr.bf16.mxu0 %v5777_v0  ;;  %1279 = vmatpush1.bf16.msra.mxu1 %v5245_v43 }
 0x192   : > { %1280 = vmatprep.subr.bf16.mxu1 %v5250_v46  ;;  %1306 = vmatprep.mubr.bf16.mxu1 %v5779_v33 }
 0x194   : > { %4720 = vmatpush3.bf16.msra.mxu0 %v6084_v6  ;;  %v5282_v6 = vld [vmem:[%s6697_s4 + $0x30] sm:$0xff]  }
 0x195   : > { %1281 = vmatpush1.bf16.msra.mxu1 %v5248_v47 }
 0x196   : > { %1282 = vmatprep.subr.bf16.mxu1 %v5253_v48 }
 0x197   : > { %4722 = vmatmul.mubr.msk.bf16.vlgmr.msra.gmra.mxu0 %vm808_vm1, %v5244_v49 }
 0x198   : > { %1380 = vmatprep.mubr.bf16.mxu0 %v5779_v33 }
 0x199   : > { %1283 = vmatpush1.bf16.msra.mxu1 %v5251_v50 }
 0x19a   : > { %1284 = vmatprep.subr.bf16.mxu1 %v5256_v51  ;;  %v1343_v51 = vld [vmem:[#allocation8] sm:$0xf] }
 0x19d   : > { %1285 = vmatpush1.bf16.msra.mxu1 %v5254_v52  ;;  %v5263_v52 = vld [vmem:[%s6697_s4 + $0xf8] sm:$0xff]  }
 0x19e   : > { %1286 = vmatprep.subr.bf16.mxu1 %v5259_v53  ;;  %v1424_v53 = vld [vmem:[#allocation8 + $0x4] sm:$0xf] }
 0x1a1   : > { %1287 = vmatpush1.bf16.msra.mxu1 %v5257_v54  ;;  %v5264_v54 = vld [vmem:[%s6697_s4 + $0xb8] sm:$0xff]  }
 0x1a2   : > { %1288 = vmatprep.subr.bf16.mxu1 %v5262_v55  ;;  %v5265_v55 = vld [vmem:[%s6697_s4 + $0xf0] sm:$0xff]  }
 0x1a5   : > { %1289 = vmatpush1.bf16.msra.mxu1 %v5260_v56  ;;  %v5266_v56 = vld [vmem:[%s6697_s4 + $0xb0] sm:$0xff]  }
 0x1a6   : > { %4516 = vmatprep.subr.bf16.mxu1 %v5279_v3  ;;  %v5276_v3 = vld [vmem:[%s6697_s4 + $0x88] sm:$0xff]  }
 0x24f   : > { %v1030_v57 = vpop.f32.mrf.mxu0  ;;  %v1136_v17 = vpop.f32.mrf.mxu1 }
 0x250   : > { %v1137_v25 = vadd.f32 %v1136_v17, %v1030_v57  ;;  %v5267_v57 = vld [vmem:[%s6697_s4 + $0xe8] sm:$0xff]   ;;  %v5298_v17 = vld [vmem:[%s6697_s4 + $0x130] sm:$0xff]  }
 0x251   : > { %v1032_v58 = vpop.f32.mrf.mxu0  ;;  %v1138_v19 = vpop.f32.mrf.mxu1 }
 0x252   : > { %v1139_v28 = vadd.f32 %v1138_v19, %v1032_v58  ;;  %v5268_v58 = vld [vmem:[%s6697_s4 + $0xa8] sm:$0xff]  }
 0x253   : > { %v1034_v59 = vpop.f32.mrf.mxu0  ;;  %v1140_v21 = vpop.f32.mrf.mxu1  ;;  %v5299_v19 = vld [vmem:[%s6697_s4 + $0x168] sm:$0xff]  }
 0x254   : > { %v1141_v32 = vadd.f32 %v1140_v21, %v1034_v59  ;;  %v5269_v59 = vld [vmem:[%s6697_s4 + $0xe0] sm:$0xff]  }
 0x255   : > { %v1036_v60 = vpop.f32.mrf.mxu0  ;;  %v1142_v23 = vpop.f32.mrf.mxu1 }
 0x256   : > { %v1143_v37 = vadd.f32 %v1142_v23, %v1036_v60  ;;  %v5270_v60 = vld [vmem:[%s6697_s4 + $0xa0] sm:$0xff]  }
 0x257   : > { %v1190_v61 = vpop.f32.mrf.mxu0 }
 0x259   : > { %v4723_v62 = vpop.f32.mrf.mxu0 }
 0x25a   : > { %v5272_v62 = vld [vmem:[%s6697_s4 + $0x98] sm:$0xff]  }
 0x25b   : > { %v1193_v63 = vpop.f32.mrf.mxu0 }
 0x25c   : > { %v1197_v1 = vpack.c.bf16 %v1193_v63, %v1190_v61  ;;  %v5271_v61 = vld [vmem:[%s6697_s4 + $0xd8] sm:$0xff]   ;;  %v5273_v63 = vld [vmem:[%s6697_s4 + $0xd0] sm:$0xff]  }
 0x25d   : > { %v4724_v2 = vpop.f32.mrf.mxu0 }
 0x25e   : > { %4207 = vmatmul.mubr.msk.bf16.vlgmr.msra.gmra.mxu1 %vm992_vm2, %v1197_v1  ;;  %v5274_v1 = vld [vmem:[%s6697_s4 + $0x90] sm:$0xff]   ;;  %v5275_v2 = vld [vmem:[%s6697_s4 + $0xc8] sm:$0xff]  }
 0x25f   : > { %4517 = vmatpush3.bf16.msra.mxu1 %v5280_v4  ;;  %v5277_v4 = vld [vmem:[%s6697_s4 + $0xc0] sm:$0xff]  }
 0x260   : > { %4518 = vmatprep.subr.bf16.mxu1 %v5281_v5  ;;  %v5278_v5 = vld [vmem:[%s6697_s4 + $0x80] sm:$0xff]  }
 0x263   : > { %4519 = vmatpush3.bf16.msra.mxu1 %v5282_v6  ;;  %v5293_v6 = vld [vmem:[%s6697_s4 + $0x40] sm:$0xff]  }
 0x264   : > { %4520 = vmatprep.subr.bf16.mxu1 %v5283_v7  ;;  %v5294_v7 = vld [vmem:[%s6697_s4] sm:$0xff]  }
 0x267   : > { %4521 = vmatpush3.bf16.msra.mxu1 %v5284_v8  ;;  %v5295_v8 = vld [vmem:[%s6697_s4 + $0x178] sm:$0xff]  }
 0x268   : > { %4522 = vmatprep.subr.bf16.mxu1 %v5285_v9 }
 0x26b   : > { %4523 = vmatpush3.bf16.msra.mxu1 %v5286_v10 }
 0x26c   : > { %4524 = vmatprep.subr.bf16.mxu1 %v5287_v11 }
 0x26f   : > { %4525 = vmatpush3.bf16.msra.mxu1 %v5288_v12  ;;  %v5296_v12 = vld [vmem:[%s6697_s4 + $0x138] sm:$0xff]  }
 0x270   : > { %4526 = vmatprep.subr.bf16.mxu1 %v5289_v13 }
 0x273   : > { %4527 = vmatpush3.bf16.msra.mxu1 %v5290_v14 }
 0x274   : > { %4528 = vmatprep.subr.bf16.mxu1 %v5291_v15  ;;  %v5297_v15 = vld [vmem:[%s6697_s4 + $0x170] sm:$0xff]  }
 0x277   : > { %4529 = vmatpush3.bf16.msra.mxu1 %v5292_v16 }
 0x278   : > { %4530 = vmatprep.subr.bf16.mxu1 %v5293_v6 }
 0x27b   : > { %4531 = vmatpush3.bf16.msra.mxu1 %v5294_v7 }
 0x27c   : > { %4538 = vmatprep.subr.bf16.mxu1 %v5295_v8 }
 0x31e   : > { %v1308_v27 = vpop.f32.mrf.mxu1 }
 0x31f   : > { %v1317_v29 = vadd.f32 %v1308_v27, %v1137_v25  ;;  %v5301_v27 = vld [vmem:[%s6697_s4 + $0x160] sm:$0xff]  }
 0x320   : > { %v1310_v31 = vpop.f32.mrf.mxu1 }
 0x321   : > { %v1318_v34 = vadd.f32 %v1310_v31, %v1139_v28  ;;  %v1333_v38 = vadd.f32 %v1326_v30, %v1317_v29  ;;  %v5302_v28 = vld [vmem:[%s6697_s4 + $0x120] sm:$0xff]   ;;  %v5304_v29 = vld [vmem:[%s6697_s4 + $0x118] sm:$0xff]   ;;  %v5306_v31 = vld [vmem:[%s6697_s4 + $0x110] sm:$0xff]  }
 0x322   : > { %v1312_v36 = vpop.f32.mrf.mxu1 }
 0x323   : > { %v1319_v39 = vadd.f32 %v1312_v36, %v1141_v32  ;;  %v1334_v41 = vadd.f32 %v1330_v35, %v1318_v34  ;;  %v1337_v44 = vmax.f32 %v1333_v38, 0.0  ;;  %v5307_v32 = vld [vmem:[%s6697_s4 + $0x148] sm:$0xff]   ;;  %v5310_v36 = vld [vmem:[%s6697_s4 + $0x100] sm:$0xff]  }
 0x324   : > { %v1314_v40 = vpop.f32.mrf.mxu1  ;;  %v5308_v34 = vld [vmem:[%s6697_s4 + $0x108] sm:$0xff]  }
 0x325   : > { %v1335_v42 = vadd.f32 %v1326_v30, %v1319_v39  ;;  %v1320_v43 = vadd.f32 %v1314_v40, %v1143_v37  ;;  %v1338_v47 = vmax.f32 %v1334_v41, 0.0  ;;  %v5305_v30 = vld [vmem:[%s6697_s4 + $0x150] sm:$0xff]  }
 0x327   : > { %v1339_v45 = vmax.f32 %v1335_v42, 0.0  ;;  %v1336_v46 = vadd.f32 %v1330_v35, %v1320_v43  ;;  %v5309_v35 = vld [vmem:[%s6697_s4 + $0x140] sm:$0xff]  }
 0x329   : > { %v6148_v48 = vpack.c.bf16 %v1339_v45, %v1337_v44  ;;  %v1340_v49 = vmax.f32 %v1336_v46, 0.0 }
 0x32b   : > { %v1342_v50 = vpack.c.bf16 %v1340_v49, %v1338_v47 }
 0x32d   : > { %1362 = vmatprep.subr.bf16.mxu0 %v1342_v50 }
 0x32e   : > { %1363 = vmatpush1.bf16.msra.mxu0 %v6148_v48 }
 0x32f   : > { %1442 = vmatprep.subr.bf16.mxu0 %v1342_v50 }
 0x331   : > { %4208 = vmatmul.mubr.msk.bf16.vlgmr.msra.gmra.mxu0 %vm1344_vm3, %v1343_v51 }
 0x332   : > { %1443 = vmatpush1.bf16.msra.mxu0 %v6148_v48  ;;  %1460 = vmatprep.mubr.bf16.mxu0 %v5779_v33 }
 0x333   : > { %4494 = vmatprep.subr.bf16.mxu0 %v5263_v52 }
 0x339   : > { %4209 = vmatmul.mubr.msk.bf16.vlgmr.msra.gmra.mxu0 %vm1344_vm3, %v1424_v53 }
 0x33a   : > { %4495 = vmatpush3.bf16.msra.mxu0 %v5264_v54  ;;  %v5311_v54 = vld [vmem:[#allocation11 + $0x38] sm:$0xff]  }
 0x33b   : > { %4496 = vmatprep.subr.bf16.mxu0 %v5265_v55  ;;  %v5312_v55 = vld [vmem:[#allocation11 + $0x30] sm:$0xff]  }
 0x33e   : > { %4497 = vmatpush3.bf16.msra.mxu0 %v5266_v56  ;;  %v5314_v56 = vld [vmem:[#allocation11 + $0x28] sm:$0xff]  }
 0x33f   : > { %4498 = vmatprep.subr.bf16.mxu0 %v5267_v57  ;;  %v5316_v57 = vld [vmem:[#allocation11 + $0x20] sm:$0xff]  }
 0x342   : > { %4499 = vmatpush3.bf16.msra.mxu0 %v5268_v58  ;;  %v5318_v58 = vld [vmem:[#allocation11 + $0x18] sm:$0xff]  }
 0x343   : > { %4500 = vmatprep.subr.bf16.mxu0 %v5269_v59  ;;  %v5320_v59 = vld [vmem:[#allocation11 + $0x10] sm:$0xff]  }
 0x346   : > { %4501 = vmatpush3.bf16.msra.mxu0 %v5270_v60  ;;  %v5322_v60 = vld [vmem:[#allocation11 + $0x8] sm:$0xff]  }
 0x347   : > { %4502 = vmatprep.subr.bf16.mxu0 %v5271_v61 }
 0x34a   : > { %4503 = vmatpush3.bf16.msra.mxu0 %v5272_v62 }
 0x34b   : > { %4504 = vmatprep.subr.bf16.mxu0 %v5273_v63 }
 0x34e   : > { %4505 = vmatpush3.bf16.msra.mxu0 %v5274_v1  ;;  %v4323_v1 = vld [vmem:[#allocation10] ss:$0 sm:$0xff] }
 0x34f   : > { %4506 = vmatprep.subr.bf16.mxu0 %v5275_v2 }
 0x352   : > { %4507 = vmatpush3.bf16.msra.mxu0 %v5276_v3 }
 0x353   : > { %4508 = vmatprep.subr.bf16.mxu0 %v5277_v4 }
 0x356   : > { %4509 = vmatpush3.bf16.msra.mxu0 %v5278_v5 }
 0x357   : > { %1795 = vmatprep.subr.bf16.mxu0 %v1342_v50 }
 0x3f1   : > { %v1382_v9 = vpop.f32.mrf.mxu0 }
 0x3f2   : > { %v1389_v13 = vpack.c.bf16 %v1382_v9, %v1382_v9  ;;  %v2004_v9 = vld [vmem:[%s6628_s7] sm:$0xf] }
 0x3f3   : > { %v1384_v10 = vpop.f32.mrf.mxu0 }
 0x3f4   : > { %v1390_v11 = vpack.c.bf16 %v1384_v10, %v1384_v10  ;;  %v4325_v10 = vld [vmem:[%s6628_s7 + $0x4] sm:$0xf] }
 0x3f5   : > { %v1386_v14 = vpop.f32.mrf.mxu0 }
 0x3f6   : > { %1768 = vmatprep.mubr.bf16.mxu1 %v1390_v11  ;;  %v5313_v11 = vld [vmem:[#allocation11 + $0x78] sm:$0xff]   ;;  %v5319_v14 = vld [vmem:[#allocation11 + $0x60] sm:$0xff]  }
 0x3f7   : > { %v1387_v16 = vpop.f32.mrf.mxu0  ;;  %1769 = vmatmul.mubr.bf16.vlgmr.msra.gmra.mxu1 %v1389_v13  ;;  %v5317_v13 = vld [vmem:[#allocation11 + $0x68] sm:$0xff]  }
 0x3f8   : > { %4539 = vmatpush3.bf16.msra.mxu1 %v5296_v12  ;;  %v5315_v12 = vld [vmem:[#allocation11 + $0x70] sm:$0xff]  }
 0x3f9   : > { %v1462_v18 = vpop.f32.mrf.mxu0  ;;  %4540 = vmatprep.subr.bf16.mxu1 %v5297_v15  ;;  %v5321_v15 = vld [vmem:[#allocation11 + $0x58] sm:$0xff]   ;;  %v5323_v16 = vld [vmem:[#allocation11 + $0x50] sm:$0xff]  }
 0x3fa   : > { %v1469_v22 = vpack.c.bf16 %v1462_v18, %v1462_v18  ;;  %v5325_v18 = vld [vmem:[#allocation11 + $0x48] sm:$0xff]  }
 0x3fb   : > { %v1464_v20 = vpop.f32.mrf.mxu0 }
 0x3fc   : > { %v1470_v21 = vpack.c.bf16 %v1464_v20, %v1464_v20  ;;  %4541 = vmatpush3.bf16.msra.mxu1 %v5298_v17  ;;  %v5324_v17 = vld [vmem:[#allocation11] sm:$0xff]  }
 0x3fd   : > { %v1466_v23 = vpop.f32.mrf.mxu0  ;;  %4542 = vmatprep.subr.bf16.mxu1 %v5299_v19  ;;  %v5326_v19 = vld [vmem:[#allocation11 + $0x40] sm:$0xff]  }
 0x3fe   : > { %1632 = vmatprep.mubr.bf16.mxu0 %v1470_v21 }
 0x3ff   : > { %v1467_v25 = vpop.f32.mrf.mxu0  ;;  %1633 = vmatmul.mubr.bf16.vlgmr.msra.gmra.mxu0 %v1469_v22 }
 0x400   : > { %1796 = vmatpush1.bf16.msra.mxu0 %v6148_v48  ;;  %1813 = vmatprep.mubr.bf16.mxu0 %v5779_v33  ;;  %v5303_v33 = vld [vmem:[%s6697_s4 + $0x158] sm:$0xff]  }
 0x401   : > { %4543 = vmatpush3.bf16.msra.mxu1 %v5300_v24  ;;  %4725 = vmatprep.subr.bf16.mxu0 %v5777_v0 }
 0x402   : > { %4544 = vmatprep.subr.bf16.mxu1 %v5301_v27 }
 0x405   : > { %4545 = vmatpush3.bf16.msra.mxu1 %v5302_v28 }
 0x406   : > { %4546 = vmatprep.subr.bf16.mxu1 %v5303_v33 }
 0x407   : > { %4274 = vmatmul.mubr.msk.bf16.vlgmr.msra.gmra.mxu0 %vm1344_vm3, %v1777_v26 }
 0x408   : > { %4727 = vmatprep.mubr.msk.bf16.mxu0 %vm5778_vm0, %v5777_v0 }
 0x409   : > { %4547 = vmatpush3.bf16.msra.mxu1 %v5304_v29  ;;  %v4343_v29 = vld [vmem:[%s6628_s7 + $0x8] sm:$0xf] }
 0x40a   : > { %4548 = vmatprep.subr.bf16.mxu1 %v5305_v30  ;;  %v5327_v30 = vld [vmem:[#allocation11 + $0xb8] sm:$0xff]  }
 0x40d   : > { %4549 = vmatpush3.bf16.msra.mxu1 %v5306_v31  ;;  %v5328_v31 = vld [vmem:[#allocation11 + $0xb0] sm:$0xff]  }
 0x40e   : > { %4550 = vmatprep.subr.bf16.mxu1 %v5307_v32  ;;  %v5329_v32 = vld [vmem:[#allocation11 + $0xa8] sm:$0xff]  }
 0x411   : > { %4551 = vmatpush3.bf16.msra.mxu1 %v5308_v34  ;;  %v5330_v34 = vld [vmem:[#allocation11 + $0xa0] sm:$0xff]  }
 0x412   : > { %4552 = vmatprep.subr.bf16.mxu1 %v5309_v35  ;;  %v5331_v35 = vld [vmem:[#allocation11 + $0x98] sm:$0xff]  }
 0x415   : > { %4553 = vmatpush3.bf16.msra.mxu1 %v5310_v36  ;;  %v5332_v36 = vld [vmem:[#allocation11 + $0x90] sm:$0xff]  }
 0x416   : > { %4757 = vmatprep.subr.bf16.mxu1 %v5777_v0 }
 0x4b7   : > { %v4532_v37 = vpop.f32.mrf.mxu1 }
 0x4b9   : > { %v4533_v38 = vpop.f32.mrf.mxu1 }
 0x4ba   : > { %v4534_v39 = vadd.f32 %v4533_v38, %v4532_v37  ;;  %v5333_v37 = vld [vmem:[#allocation11 + $0x88] sm:$0xff]   ;;  %v5334_v38 = vld [vmem:[#allocation11 + $0x80] sm:$0xff]  }
 0x4bb   : > { %v4535_v40 = vpop.f32.mrf.mxu1 }
 0x4bd   : > { %v4536_v41 = vpop.f32.mrf.mxu1 }
 0x4bf   : > { %v4510_v42 = vpop.f32.mrf.mxu0 }
 0x4c1   : > { %v4511_v43 = vpop.f32.mrf.mxu0 }
 0x4c2   : > { %v4512_v44 = vadd.f32 %v4511_v43, %v4510_v42 }
 0x4c3   : > { %v4513_v45 = vpop.f32.mrf.mxu0 }
 0x4c4   : > { %v1771_v46 = vadd.f32 %v4534_v39, %v4512_v44 }
 0x4c5   : > { %v4514_v47 = vpop.f32.mrf.mxu0 }
 0x4c7   : > { %v1815_v48 = vpop.f32.mrf.mxu0 }
 0x4c8   : > { %v1822_v51 = vpack.c.bf16 %v1815_v48, %v1815_v48 }
 0x4c9   : > { %v1817_v49 = vpop.f32.mrf.mxu0 }
 0x4ca   : > { %v1823_v50 = vpack.c.bf16 %v1817_v49, %v1817_v49 }
 0x4cb   : > { %v1819_v52 = vpop.f32.mrf.mxu0 }
 0x4cc   : > { %1985 = vmatprep.mubr.bf16.mxu1 %v1823_v50 }
 0x4cd   : > { %v1820_v53 = vpop.f32.mrf.mxu0  ;;  %1986 = vmatmul.mubr.bf16.vlgmr.msra.gmra.mxu1 %v1822_v51 }
 0x4ce   : > { %4773 = vmatprep.mubr.msk.bf16.mxu1 %vm5778_vm0, %v5777_v0  ;;  %4758 = vmatpush3.bf16.msra.mxu1 %v5311_v54  ;;  %v5335_v53 = vld [vmem:[#allocation16 + $0x38] sm:$0xff]   ;;  %v5336_v54 = vld [vmem:[#allocation16 + $0x30] sm:$0xff]  }
 0x4cf   : > { %4759 = vmatprep.subr.bf16.mxu1 %v5777_v0 }
 0x4d2   : > { %4760 = vmatpush3.bf16.msra.mxu1 %v5312_v55  ;;  %v5338_v55 = vld [vmem:[#allocation16 + $0x28] sm:$0xff]  }
 0x4d3   : > { %4761 = vmatprep.subr.bf16.mxu1 %v5777_v0 }
 0x4d6   : > { %4762 = vmatpush3.bf16.msra.mxu1 %v5314_v56  ;;  %v5340_v56 = vld [vmem:[#allocation16 + $0x20] sm:$0xff]  }
 0x4d7   : > { %4763 = vmatprep.subr.bf16.mxu1 %v5777_v0 }
 0x4da   : > { %4764 = vmatpush3.bf16.msra.mxu1 %v5316_v57  ;;  %v5342_v57 = vld [vmem:[#allocation16 + $0x18] sm:$0xff]  }
 0x4db   : > { %4765 = vmatprep.subr.bf16.mxu1 %v5777_v0 }
 0x4de   : > { %4766 = vmatpush3.bf16.msra.mxu1 %v5318_v58  ;;  %v5344_v58 = vld [vmem:[#allocation16 + $0x10] sm:$0xff]  }
 0x4df   : > { %4767 = vmatprep.subr.bf16.mxu1 %v5777_v0 }
 0x4e2   : > { %4768 = vmatpush3.bf16.msra.mxu1 %v5320_v59  ;;  %v5346_v59 = vld [vmem:[#allocation16 + $0x8] sm:$0xff]  }
 0x4e3   : > { %4769 = vmatprep.subr.bf16.mxu1 %v5777_v0 }
 0x4e6   : > { %4770 = vmatpush3.bf16.msra.mxu1 %v5322_v60 }
 0x4e7   : > { %4771 = vmatprep.subr.bf16.mxu1 %v5777_v0 }
 0x4ea   : > { %4772 = vmatpush3.bf16.msra.mxu1 %v5324_v17  ;;  %v5350_v17 = vld [vmem:[#allocation16 + $0x40] sm:$0xff]  }
 0x4eb   : > { %4803 = vmatprep.subr.bf16.mxu1 %v5777_v0 }
 0x58d   : > { %v4554_v61 = vpop.f32.mrf.mxu1 }
 0x58f   : > { %v4555_v62 = vpop.f32.mrf.mxu1 }
 0x590   : > { %v4556_v63 = vadd.f32 %v4555_v62, %v4554_v61  ;;  %v4353_v61 = vld [vmem:[#allocation13] ss:$0 sm:$0xff] }
 0x591   : > { %v4557_v2 = vpop.f32.mrf.mxu1 }
 0x592   : > { %v1993_v3 = vadd.f32 %v4556_v63, %v1771_v46 }
 0x593   : > { %v4558_v4 = vpop.f32.mrf.mxu1 }
 0x594   : > { %v2001_v5 = vadd.f32 %v4323_v1, %v1993_v3 }
 0x596   : > { %v2002_v6 = vmax.f32 %v2001_v5, 0.0 }
 0x598   : > { %v2003_v7 = vpack.c.bf16 %v2002_v6, %v2002_v6 }
 0x59a   : > { %v2011_v8 = vsel %vm2009_vm4, %v2003_v7, 0  ;;  %v2471_v7 = vld [vmem:[#allocation14] sm:$0x3] }
 0x59b   : > { %4726 = vmatpush3.bf16.msra.mxu0 %v2011_v8 }
 0x59c   : > { %4731 = vmatprep.subr.bf16.mxu0 %v5777_v0 }
 0x59e   : > { %4728 = vmatmul.mubr.msk.bf16.vlgmr.msra.gmra.mxu0 %vm2005_vm5, %v2004_v9  ;;  %v5337_v9 = vld [vmem:[#allocation16 + $0x78] sm:$0xff]  }
 0x59f   : > { %4732 = vmatpush3.bf16.msra.mxu0 %v2011_v8  ;;  %4733 = vmatprep.mubr.msk.bf16.mxu0 %vm5778_vm0, %v5777_v0 }
 0x5a0   : > { %4737 = vmatprep.subr.bf16.mxu0 %v5777_v0 }
 0x5a6   : > { %4734 = vmatmul.mubr.msk.bf16.vlgmr.msra.gmra.mxu0 %vm2005_vm5, %v4325_v10  ;;  %v5339_v10 = vld [vmem:[#allocation16 + $0x70] sm:$0xff]  }
 0x5a7   : > { %4738 = vmatpush3.bf16.msra.mxu0 %v5313_v11  ;;  %4753 = vmatprep.mubr.msk.bf16.mxu0 %vm5778_vm0, %v5777_v0  ;;  %v5341_v11 = vld [vmem:[#allocation16 + $0x68] sm:$0xff]  }
 0x5a8   : > { %4739 = vmatprep.subr.bf16.mxu0 %v5777_v0 }
 0x5ab   : > { %4740 = vmatpush3.bf16.msra.mxu0 %v5315_v12  ;;  %v5343_v12 = vld [vmem:[#allocation16 + $0x60] sm:$0xff]  }
 0x5ac   : > { %4741 = vmatprep.subr.bf16.mxu0 %v5777_v0 }
 0x5af   : > { %4742 = vmatpush3.bf16.msra.mxu0 %v5317_v13  ;;  %v5345_v13 = vld [vmem:[#allocation16 + $0x58] sm:$0xff]  }
 0x5b0   : > { %4743 = vmatprep.subr.bf16.mxu0 %v5777_v0 }
 0x5b3   : > { %4744 = vmatpush3.bf16.msra.mxu0 %v5319_v14  ;;  %v5347_v14 = vld [vmem:[#allocation16 + $0x50] sm:$0xff]  }
 0x5b4   : > { %4745 = vmatprep.subr.bf16.mxu0 %v5777_v0 }
 0x5b7   : > { %4746 = vmatpush3.bf16.msra.mxu0 %v5321_v15  ;;  %v5348_v15 = vld [vmem:[#allocation16] sm:$0xff]  }
 0x5b8   : > { %4747 = vmatprep.subr.bf16.mxu0 %v5777_v0 }
 0x5bb   : > { %4748 = vmatpush3.bf16.msra.mxu0 %v5323_v16  ;;  %v5349_v16 = vld [vmem:[#allocation16 + $0x48] sm:$0xff]  }
 0x5bc   : > { %4749 = vmatprep.subr.bf16.mxu0 %v5777_v0 }
 0x5bf   : > { %4750 = vmatpush3.bf16.msra.mxu0 %v5325_v18 }
 0x5c0   : > { %4751 = vmatprep.subr.bf16.mxu0 %v5777_v0 }
 0x5c3   : > { %4752 = vmatpush3.bf16.msra.mxu0 %v5326_v19 }
 0x5c4   : > { %4777 = vmatprep.subr.bf16.mxu0 %v5777_v0 }
 0x65e   : > { %v2047_v20 = vpop.f32.mrf.mxu0 }
 0x65f   : > { %v2053_v21 = vpack.c.bf16 %v2047_v20, %v2047_v20 }
 0x660   : > { %v4729_v22 = vpop.f32.mrf.mxu0 }
 0x661   : > { %4774 = vmatmul.mubr.bf16.vlgmr.msra.gmra.mxu1 %v2053_v21 }
 0x662   : > { %v2050_v23 = vpop.f32.mrf.mxu0  ;;  %4805 = vmatprep.mubr.msk.bf16.mxu1 %vm5778_vm0, %v5777_v0 }
 0x664   : > { %v4730_v24 = vpop.f32.mrf.mxu0 }
 0x666   : > { %v2109_v25 = vpop.f32.mrf.mxu0 }
 0x667   : > { %v2115_v26 = vpack.c.bf16 %v2109_v25, %v2109_v25 }
 0x668   : > { %v4735_v27 = vpop.f32.mrf.mxu0 }
 0x669   : > { %4754 = vmatmul.mubr.bf16.vlgmr.msra.gmra.mxu0 %v2115_v26 }
 0x66a   : > { %4778 = vmatpush3.bf16.msra.mxu0 %v2011_v8  ;;  %v2112_v28 = vpop.f32.mrf.mxu0  ;;  %4779 = vmatprep.mubr.msk.bf16.mxu0 %vm5778_vm0, %v5777_v0  ;;  %v2536_v8 = vld [vmem:[#allocation14 + $0x2] sm:$0x3] }
 0x66b   : > { %4783 = vmatprep.subr.bf16.mxu0 %v5777_v0  ;;  %v2775_v28 = vld [vmem:[#allocation14 + $0x4] sm:$0x3] }
 0x66c   : > { %v4736_v33 = vpop.f32.mrf.mxu0 }
 0x66d   : > { %v5351_v33 = vld [vmem:[#allocation16 + $0xb8] sm:$0xff]  }
 0x671   : > { %4780 = vmatmul.mubr.msk.bf16.vlgmr.msra.gmra.mxu0 %vm2005_vm5, %v4343_v29  ;;  %v5352_v29 = vld [vmem:[#allocation16 + $0xb0] sm:$0xff]  }
 0x672   : > { %4784 = vmatpush3.bf16.msra.mxu0 %v5327_v30  ;;  %4799 = vmatprep.mubr.msk.bf16.mxu0 %vm5778_vm0, %v5777_v0  ;;  %v5353_v30 = vld [vmem:[#allocation16 + $0xa8] sm:$0xff]  }
 0x673   : > { %4785 = vmatprep.subr.bf16.mxu0 %v5777_v0 }
 0x676   : > { %4786 = vmatpush3.bf16.msra.mxu0 %v5328_v31  ;;  %v5354_v31 = vld [vmem:[#allocation16 + $0xa0] sm:$0xff]  }
 0x677   : > { %4787 = vmatprep.subr.bf16.mxu0 %v5777_v0 }
 0x67a   : > { %4788 = vmatpush3.bf16.msra.mxu0 %v5329_v32  ;;  %v5355_v32 = vld [vmem:[#allocation16 + $0x98] sm:$0xff]  }
 0x67b   : > { %4789 = vmatprep.subr.bf16.mxu0 %v5777_v0 }
 0x67e   : > { %4790 = vmatpush3.bf16.msra.mxu0 %v5330_v34  ;;  %v5356_v34 = vld [vmem:[#allocation16 + $0x90] sm:$0xff]  }
 0x67f   : > { %4791 = vmatprep.subr.bf16.mxu0 %v5777_v0 }
 0x682   : > { %4792 = vmatpush3.bf16.msra.mxu0 %v5331_v35  ;;  %v5357_v35 = vld [vmem:[#allocation16 + $0x88] sm:$0xff]  }
 0x683   : > { %4793 = vmatprep.subr.bf16.mxu0 %v5777_v0 }
 0x686   : > { %4794 = vmatpush3.bf16.msra.mxu0 %v5332_v36  ;;  %v5358_v36 = vld [vmem:[#allocation16 + $0x80] sm:$0xff]  }
 0x687   : > { %4795 = vmatprep.subr.bf16.mxu0 %v5777_v0 }
 0x68a   : > { %4796 = vmatpush3.bf16.msra.mxu0 %v5333_v37 }
 0x68b   : > { %4797 = vmatprep.subr.bf16.mxu0 %v5777_v0 }
 0x68e   : > { %4798 = vmatpush3.bf16.msra.mxu0 %v5334_v38 }
 0x68f   : > { %4835 = vmatprep.subr.bf16.mxu0 %v5777_v0 }
 0x721   : > { %v2303_v39 = vpop.f32.mrf.mxu1 }
 0x723   : > { %v4775_v40 = vpop.f32.mrf.mxu1 }
 0x725   : > { %v2306_v41 = vpop.f32.mrf.mxu1 }
 0x727   : > { %v4776_v42 = vpop.f32.mrf.mxu1 }
 0x729   : > { %v2215_v43 = vpop.f32.mrf.mxu0 }
 0x72a   : > { %v2304_v44 = vadd.f32 %v2303_v39, %v2215_v43 }
 0x72b   : > { %v4755_v45 = vpop.f32.mrf.mxu0 }
 0x72d   : > { %v2218_v46 = vpop.f32.mrf.mxu0 }
 0x72f   : > { %v4756_v47 = vpop.f32.mrf.mxu0 }
 0x731   : > { %v2348_v48 = vpop.f32.mrf.mxu0 }
 0x732   : > { %v2354_v49 = vpack.c.bf16 %v2348_v48, %v2348_v48 }
 0x733   : > { %v4781_v50 = vpop.f32.mrf.mxu0 }
 0x734   : > { %4800 = vmatmul.mubr.bf16.vlgmr.msra.gmra.mxu0 %v2354_v49 }
 0x735   : > { %v2351_v51 = vpop.f32.mrf.mxu0  ;;  %4851 = vmatprep.mubr.msk.bf16.mxu0 %vm5778_vm0, %v5777_v0  ;;  %4836 = vmatpush3.bf16.msra.mxu0 %v5335_v53  ;;  %v5362_v53 = vld [vmem:[#allocation17 + $0x28] sm:$0xff]  }
 0x736   : > { %4837 = vmatprep.subr.bf16.mxu0 %v5777_v0  ;;  %v5359_v51 = vld [vmem:[#allocation17 + $0x38] sm:$0xff]  }
 0x737   : > { %v4782_v52 = vpop.f32.mrf.mxu0 }
 0x738   : > { %v5360_v52 = vld [vmem:[#allocation17 + $0x30] sm:$0xff]  }
 0x739   : > { %4838 = vmatpush3.bf16.msra.mxu0 %v5336_v54  ;;  %v5364_v54 = vld [vmem:[#allocation17 + $0x20] sm:$0xff]  }
 0x73a   : > { %4839 = vmatprep.subr.bf16.mxu0 %v5777_v0 }
 0x73d   : > { %4840 = vmatpush3.bf16.msra.mxu0 %v5338_v55  ;;  %v5366_v55 = vld [vmem:[#allocation17 + $0x18] sm:$0xff]  }
 0x73e   : > { %4841 = vmatprep.subr.bf16.mxu0 %v5777_v0 }
 0x741   : > { %4842 = vmatpush3.bf16.msra.mxu0 %v5340_v56  ;;  %v5368_v56 = vld [vmem:[#allocation17 + $0x10] sm:$0xff]  }
 0x742   : > { %4843 = vmatprep.subr.bf16.mxu0 %v5777_v0 }
 0x745   : > { %4844 = vmatpush3.bf16.msra.mxu0 %v5342_v57  ;;  %v5370_v57 = vld [vmem:[#allocation17 + $0x8] sm:$0xff]  }
 0x746   : > { %4845 = vmatprep.subr.bf16.mxu0 %v5777_v0 }
 0x749   : > { %4846 = vmatpush3.bf16.msra.mxu0 %v5344_v58 }
 0x74a   : > { %4847 = vmatprep.subr.bf16.mxu0 %v5777_v0 }
 0x74d   : > { %4848 = vmatpush3.bf16.msra.mxu0 %v5346_v59  ;;  %v4381_v59 = vld [vmem:[%s6633_s12] ss:$0 sm:$0xff] }
 0x74e   : > { %4849 = vmatprep.subr.bf16.mxu0 %v5777_v0 }
 0x751   : > { %4850 = vmatpush3.bf16.msra.mxu0 %v5348_v15  ;;  %v5374_v15 = vld [vmem:[#allocation17 + $0x40] sm:$0xff]  }
 0x752   : > { %4881 = vmatprep.subr.bf16.mxu0 %v5777_v0 }
 0x7f4   : > { %v2454_v60 = vpop.f32.mrf.mxu0 }
 0x7f5   : > { %v2460_v62 = vadd.f32 %v2454_v60, %v2304_v44 }
 0x7f6   : > { %v4801_v63 = vpop.f32.mrf.mxu0 }
 0x7f7   : > { %v2468_v1 = vadd.f32 %v4353_v61, %v2460_v62 }
 0x7f8   : > { %v2457_v2 = vpop.f32.mrf.mxu0 }
 0x7f9   : > { %v2469_v3 = vmax.f32 %v2468_v1, 0.0 }
 0x7fa   : > { %v4802_v4 = vpop.f32.mrf.mxu0 }
 0x7fb   : > { %v2470_v5 = vpack.c.bf16 %v2469_v3, %v2469_v3 }
 0x7fd   : > { %v2476_v6 = vsel %vm2009_vm4, %v2470_v5, 0  ;;  %v2936_v5 = vld [vmem:[%s6634_s13] sm:$0x1] }
 0x7fe   : > { %4804 = vmatpush3.bf16.msra.mxu1 %v2476_v6 }
 0x7ff   : > { %4809 = vmatprep.subr.bf16.mxu1 %v5777_v0 }
 0x801   : > { %4806 = vmatmul.mubr.msk.bf16.vlgmr.msra.gmra.mxu1 %vm2005_vm5, %v2471_v7  ;;  %v5361_v7 = vld [vmem:[#allocation17 + $0x78] sm:$0xff]  }
 0x802   : > { %4810 = vmatpush3.bf16.msra.mxu1 %v2476_v6  ;;  %4811 = vmatprep.mubr.msk.bf16.mxu1 %vm5778_vm0, %v5777_v0 }
 0x803   : > { %4815 = vmatprep.subr.bf16.mxu1 %v5777_v0 }
 0x809   : > { %4812 = vmatmul.mubr.msk.bf16.vlgmr.msra.gmra.mxu1 %vm2005_vm5, %v2536_v8  ;;  %v5363_v8 = vld [vmem:[#allocation17 + $0x70] sm:$0xff]  }
 0x80a   : > { %4816 = vmatpush3.bf16.msra.mxu1 %v5337_v9  ;;  %4831 = vmatprep.mubr.msk.bf16.mxu1 %vm5778_vm0, %v5777_v0  ;;  %v5365_v9 = vld [vmem:[#allocation17 + $0x68] sm:$0xff]  }
 0x80b   : > { %4817 = vmatprep.subr.bf16.mxu1 %v5777_v0 }
 0x80e   : > { %4818 = vmatpush3.bf16.msra.mxu1 %v5339_v10  ;;  %v5367_v10 = vld [vmem:[#allocation17 + $0x60] sm:$0xff]  }
 0x80f   : > { %4819 = vmatprep.subr.bf16.mxu1 %v5777_v0 }
 0x812   : > { %4820 = vmatpush3.bf16.msra.mxu1 %v5341_v11  ;;  %v5369_v11 = vld [vmem:[#allocation17 + $0x58] sm:$0xff]  }
 0x813   : > { %4821 = vmatprep.subr.bf16.mxu1 %v5777_v0 }
 0x816   : > { %4822 = vmatpush3.bf16.msra.mxu1 %v5343_v12  ;;  %v5371_v12 = vld [vmem:[#allocation17 + $0x50] sm:$0xff]  }
 0x817   : > { %4823 = vmatprep.subr.bf16.mxu1 %v5777_v0 }
 0x81a   : > { %4824 = vmatpush3.bf16.msra.mxu1 %v5345_v13  ;;  %v5372_v13 = vld [vmem:[#allocation17] sm:$0xff]  }
 0x81b   : > { %4825 = vmatprep.subr.bf16.mxu1 %v5777_v0 }
 0x81e   : > { %4826 = vmatpush3.bf16.msra.mxu1 %v5347_v14  ;;  %v5373_v14 = vld [vmem:[#allocation17 + $0x48] sm:$0xff]  }
 0x81f   : > { %4827 = vmatprep.subr.bf16.mxu1 %v5777_v0 }
 0x822   : > { %4828 = vmatpush3.bf16.msra.mxu1 %v5349_v16 }
 0x823   : > { %4829 = vmatprep.subr.bf16.mxu1 %v5777_v0 }
 0x826   : > { %4830 = vmatpush3.bf16.msra.mxu1 %v5350_v17 }
 0x827   : > { %4855 = vmatprep.subr.bf16.mxu1 %v5777_v0 }
 0x8c1   : > { %v2512_v18 = vpop.f32.mrf.mxu1 }
 0x8c2   : > { %v2518_v19 = vpack.c.bf16 %v2512_v18, %v2512_v18 }
 0x8c3   : > { %v4807_v20 = vpop.f32.mrf.mxu1 }
 0x8c4   : > { %4852 = vmatmul.mubr.bf16.vlgmr.msra.gmra.mxu0 %v2518_v19 }
 0x8c5   : > { %v2515_v21 = vpop.f32.mrf.mxu1  ;;  %4883 = vmatprep.mubr.msk.bf16.mxu0 %vm5778_vm0, %v5777_v0 }
 0x8c7   : > { %v4808_v22 = vpop.f32.mrf.mxu1 }
 0x8c9   : > { %v2574_v23 = vpop.f32.mrf.mxu1 }
 0x8ca   : > { %v2580_v24 = vpack.c.bf16 %v2574_v23, %v2574_v23 }
 0x8cb   : > { %v4813_v25 = vpop.f32.mrf.mxu1 }
 0x8cc   : > { %4832 = vmatmul.mubr.bf16.vlgmr.msra.gmra.mxu1 %v2580_v24 }
 0x8cd   : > { %4856 = vmatpush3.bf16.msra.mxu1 %v2476_v6  ;;  %v2577_v26 = vpop.f32.mrf.mxu1  ;;  %4857 = vmatprep.mubr.msk.bf16.mxu1 %vm5778_vm0, %v5777_v0  ;;  %v4383_v6 = vld [vmem:[%s6634_s13 + $0x1] sm:$0x1] }
 0x8ce   : > { %4861 = vmatprep.subr.bf16.mxu1 %v5777_v0  ;;  %v4401_v26 = vld [vmem:[%s6634_s13 + $0x2] sm:$0x1] }
 0x8cf   : > { %v4814_v27 = vpop.f32.mrf.mxu1 }
 0x8d0   : > { %v5375_v27 = vld [vmem:[#allocation17 + $0xb8] sm:$0xff]  }
 0x8d4   : > { %4858 = vmatmul.mubr.msk.bf16.vlgmr.msra.gmra.mxu1 %vm2005_vm5, %v2775_v28  ;;  %v5376_v28 = vld [vmem:[#allocation17 + $0xb0] sm:$0xff]  }
 0x8d5   : > { %4862 = vmatpush3.bf16.msra.mxu1 %v5351_v33  ;;  %4877 = vmatprep.mubr.msk.bf16.mxu1 %vm5778_vm0, %v5777_v0  ;;  %v5377_v33 = vld [vmem:[#allocation17 + $0xa8] sm:$0xff]  }
 0x8d6   : > { %4863 = vmatprep.subr.bf16.mxu1 %v5777_v0 }
 0x8d9   : > { %4864 = vmatpush3.bf16.msra.mxu1 %v5352_v29  ;;  %v5378_v29 = vld [vmem:[#allocation17 + $0xa0] sm:$0xff]  }
 0x8da   : > { %4865 = vmatprep.subr.bf16.mxu1 %v5777_v0 }
 0x8dd   : > { %4866 = vmatpush3.bf16.msra.mxu1 %v5353_v30  ;;  %v5379_v30 = vld [vmem:[#allocation17 + $0x98] sm:$0xff]  }
 0x8de   : > { %4867 = vmatprep.subr.bf16.mxu1 %v5777_v0 }
 0x8e1   : > { %4868 = vmatpush3.bf16.msra.mxu1 %v5354_v31  ;;  %v5380_v31 = vld [vmem:[#allocation17 + $0x90] sm:$0xff]  }
 0x8e2   : > { %4869 = vmatprep.subr.bf16.mxu1 %v5777_v0 }
 0x8e5   : > { %4870 = vmatpush3.bf16.msra.mxu1 %v5355_v32  ;;  %v5381_v32 = vld [vmem:[#allocation17 + $0x88] sm:$0xff]  }
 0x8e6   : > { %4871 = vmatprep.subr.bf16.mxu1 %v5777_v0 }
 0x8e9   : > { %4872 = vmatpush3.bf16.msra.mxu1 %v5356_v34  ;;  %v5382_v34 = vld [vmem:[#allocation17 + $0x80] sm:$0xff]  }
 0x8ea   : > { %4873 = vmatprep.subr.bf16.mxu1 %v5777_v0 }
 0x8ed   : > { %4874 = vmatpush3.bf16.msra.mxu1 %v5357_v35 }
 0x8ee   : > { %4875 = vmatprep.subr.bf16.mxu1 %v5777_v0 }
 0x8f1   : > { %4876 = vmatpush3.bf16.msra.mxu1 %v5358_v36 }
 0x8f2   : > { %4913 = vmatprep.subr.bf16.mxu1 %v5777_v0 }
 0x984   : > { %v2768_v37 = vpop.f32.mrf.mxu0 }
 0x986   : > { %v4853_v38 = vpop.f32.mrf.mxu0 }
 0x988   : > { %v2771_v39 = vpop.f32.mrf.mxu0 }
 0x98a   : > { %v4854_v40 = vpop.f32.mrf.mxu0 }
 0x98c   : > { %v2680_v41 = vpop.f32.mrf.mxu1 }
 0x98d   : > { %v2769_v42 = vadd.f32 %v2768_v37, %v2680_v41 }
 0x98e   : > { %v4833_v43 = vpop.f32.mrf.mxu1 }
 0x990   : > { %v2683_v44 = vpop.f32.mrf.mxu1 }
 0x992   : > { %v4834_v45 = vpop.f32.mrf.mxu1 }
 0x994   : > { %v2813_v46 = vpop.f32.mrf.mxu1 }
 0x995   : > { %v2819_v47 = vpack.c.bf16 %v2813_v46, %v2813_v46 }
 0x996   : > { %v4859_v48 = vpop.f32.mrf.mxu1 }
 0x997   : > { %4878 = vmatmul.mubr.bf16.vlgmr.msra.gmra.mxu1 %v2819_v47 }
 0x998   : > { %v2816_v49 = vpop.f32.mrf.mxu1  ;;  %4929 = vmatprep.mubr.msk.bf16.mxu1 %vm5778_vm0, %v5777_v0  ;;  %4914 = vmatpush3.bf16.msra.mxu1 %v5359_v51  ;;  %v5386_v51 = vld [vmem:[%s6638_s17 + $0x28] sm:$0xff]  }
 0x999   : > { %4915 = vmatprep.subr.bf16.mxu1 %v5777_v0  ;;  %v5383_v49 = vld [vmem:[%s6638_s17 + $0x38] sm:$0xff]  }
 0x99a   : > { %v4860_v50 = vpop.f32.mrf.mxu1 }
 0x99b   : > { %v5384_v50 = vld [vmem:[%s6638_s17 + $0x30] sm:$0xff]  }
 0x99c   : > { %4916 = vmatpush3.bf16.msra.mxu1 %v5360_v52  ;;  %v5388_v52 = vld [vmem:[%s6638_s17 + $0x20] sm:$0xff]  }
 0x99d   : > { %4917 = vmatprep.subr.bf16.mxu1 %v5777_v0 }
 0x9a0   : > { %4918 = vmatpush3.bf16.msra.mxu1 %v5362_v53  ;;  %v5390_v53 = vld [vmem:[%s6638_s17 + $0x18] sm:$0xff]  }
 0x9a1   : > { %4919 = vmatprep.subr.bf16.mxu1 %v5777_v0 }
 0x9a4   : > { %4920 = vmatpush3.bf16.msra.mxu1 %v5364_v54  ;;  %v5392_v54 = vld [vmem:[%s6638_s17 + $0x10] sm:$0xff]  }
 0x9a5   : > { %4921 = vmatprep.subr.bf16.mxu1 %v5777_v0 }
 0x9a8   : > { %4922 = vmatpush3.bf16.msra.mxu1 %v5366_v55  ;;  %v5394_v55 = vld [vmem:[%s6638_s17 + $0x8] sm:$0xff]  }
 0x9a9   : > { %4923 = vmatprep.subr.bf16.mxu1 %v5777_v0 }
 0x9ac   : > { %4924 = vmatpush3.bf16.msra.mxu1 %v5368_v56 }
 0x9ad   : > { %4925 = vmatprep.subr.bf16.mxu1 %v5777_v0 }
 0x9b0   : > { %4926 = vmatpush3.bf16.msra.mxu1 %v5370_v57  ;;  %v4411_v57 = vld [vmem:[%s6636_s15] ss:$0 sm:$0xff] }
 0x9b1   : > { %4927 = vmatprep.subr.bf16.mxu1 %v5777_v0 }
 0x9b4   : > { %4928 = vmatpush3.bf16.msra.mxu1 %v5372_v13  ;;  %v5398_v13 = vld [vmem:[%s6638_s17 + $0x40] sm:$0xff]  }
 0x9b5   : > { %4959 = vmatprep.subr.bf16.mxu1 %v5777_v0 }
 0xa57   : > { %v2919_v58 = vpop.f32.mrf.mxu1 }
 0xa58   : > { %v2925_v60 = vadd.f32 %v2919_v58, %v2769_v42 }
 0xa59   : > { %v4879_v61 = vpop.f32.mrf.mxu1 }
 0xa5a   : > { %v2933_v62 = vadd.f32 %v4381_v59, %v2925_v60 }
 0xa5b   : > { %v2922_v63 = vpop.f32.mrf.mxu1 }
 0xa5c   : > { %v2934_v1 = vmax.f32 %v2933_v62, 0.0 }
 0xa5d   : > { %v4880_v2 = vpop.f32.mrf.mxu1 }
 0xa5e   : > { %v2935_v3 = vpack.c.bf16 %v2934_v1, %v2934_v1 }
 0xa60   : > { %v2943_v4 = vsel %vm2941_vm6, %v2935_v3, 0  ;;  %v3403_v3 = vld [vmem:[%s6637_s16] sm:$0x1] }
 0xa61   : > { %4882 = vmatpush3.bf16.msra.mxu0 %v2943_v4 }
 0xa62   : > { %4887 = vmatprep.subr.bf16.mxu0 %v5777_v0 }
 0xa64   : > { %4884 = vmatmul.mubr.msk.bf16.vlgmr.msra.gmra.mxu0 %vm2937_vm7, %v2936_v5  ;;  %v5385_v5 = vld [vmem:[%s6638_s17 + $0x78] sm:$0xff]  }
 0xa65   : > { %4888 = vmatpush3.bf16.msra.mxu0 %v2943_v4  ;;  %4889 = vmatprep.mubr.msk.bf16.mxu0 %vm5778_vm0, %v5777_v0 }
 0xa66   : > { %4893 = vmatprep.subr.bf16.mxu0 %v5777_v0 }
 0xa6c   : > { %4890 = vmatmul.mubr.msk.bf16.vlgmr.msra.gmra.mxu0 %vm2937_vm7, %v4383_v6  ;;  %v5387_v6 = vld [vmem:[%s6638_s17 + $0x70] sm:$0xff]  }
 0xa6d   : > { %4894 = vmatpush3.bf16.msra.mxu0 %v5361_v7  ;;  %4909 = vmatprep.mubr.msk.bf16.mxu0 %vm5778_vm0, %v5777_v0  ;;  %v5389_v7 = vld [vmem:[%s6638_s17 + $0x68] sm:$0xff]  }
 0xa6e   : > { %4895 = vmatprep.subr.bf16.mxu0 %v5777_v0 }
 0xa71   : > { %4896 = vmatpush3.bf16.msra.mxu0 %v5363_v8  ;;  %v5391_v8 = vld [vmem:[%s6638_s17 + $0x60] sm:$0xff]  }
 0xa72   : > { %4897 = vmatprep.subr.bf16.mxu0 %v5777_v0 }
 0xa75   : > { %4898 = vmatpush3.bf16.msra.mxu0 %v5365_v9  ;;  %v5393_v9 = vld [vmem:[%s6638_s17 + $0x58] sm:$0xff]  }
 0xa76   : > { %4899 = vmatprep.subr.bf16.mxu0 %v5777_v0 }
 0xa79   : > { %4900 = vmatpush3.bf16.msra.mxu0 %v5367_v10  ;;  %v5395_v10 = vld [vmem:[%s6638_s17 + $0x50] sm:$0xff]  }
 0xa7a   : > { %4901 = vmatprep.subr.bf16.mxu0 %v5777_v0 }
 0xa7d   : > { %4902 = vmatpush3.bf16.msra.mxu0 %v5369_v11  ;;  %v5396_v11 = vld [vmem:[%s6638_s17] sm:$0xff]  }
 0xa7e   : > { %4903 = vmatprep.subr.bf16.mxu0 %v5777_v0 }
 0xa81   : > { %4904 = vmatpush3.bf16.msra.mxu0 %v5371_v12  ;;  %v5397_v12 = vld [vmem:[%s6638_s17 + $0x48] sm:$0xff]  }
 0xa82   : > { %4905 = vmatprep.subr.bf16.mxu0 %v5777_v0 }
 0xa85   : > { %4906 = vmatpush3.bf16.msra.mxu0 %v5373_v14 }
 0xa86   : > { %4907 = vmatprep.subr.bf16.mxu0 %v5777_v0 }
 0xa89   : > { %4908 = vmatpush3.bf16.msra.mxu0 %v5374_v15 }
 0xa8a   : > { %4933 = vmatprep.subr.bf16.mxu0 %v5777_v0 }
 0xb24   : > { %v2979_v16 = vpop.f32.mrf.mxu0 }
 0xb25   : > { %v2985_v17 = vpack.c.bf16 %v2979_v16, %v2979_v16 }
 0xb26   : > { %v4885_v18 = vpop.f32.mrf.mxu0 }
 0xb27   : > { %4930 = vmatmul.mubr.bf16.vlgmr.msra.gmra.mxu1 %v2985_v17 }
 0xb28   : > { %v2982_v19 = vpop.f32.mrf.mxu0  ;;  %4961 = vmatprep.mubr.msk.bf16.mxu1 %vm5778_vm0, %v5777_v0 }
 0xb2a   : > { %v4886_v20 = vpop.f32.mrf.mxu0 }
 0xb2c   : > { %v3041_v21 = vpop.f32.mrf.mxu0 }
 0xb2d   : > { %v3047_v22 = vpack.c.bf16 %v3041_v21, %v3041_v21 }
 0xb2e   : > { %v4891_v23 = vpop.f32.mrf.mxu0 }
 0xb2f   : > { %4910 = vmatmul.mubr.bf16.vlgmr.msra.gmra.mxu0 %v3047_v22 }
 0xb30   : > { %4934 = vmatpush3.bf16.msra.mxu0 %v2943_v4  ;;  %v3044_v24 = vpop.f32.mrf.mxu0  ;;  %4935 = vmatprep.mubr.msk.bf16.mxu0 %vm5778_vm0, %v5777_v0  ;;  %v4413_v4 = vld [vmem:[%s6637_s16 + $0x1] sm:$0x1] }
 0xb31   : > { %4939 = vmatprep.subr.bf16.mxu0 %v5777_v0  ;;  %v4447_v24 = vld [vmem:[%s6637_s16 + $0x2] sm:$0x1] }
 0xb32   : > { %v4892_v25 = vpop.f32.mrf.mxu0 }
 0xb33   : > { %v5399_v25 = vld [vmem:[%s6638_s17 + $0xb8] sm:$0xff]  }
 0xb37   : > { %4936 = vmatmul.mubr.msk.bf16.vlgmr.msra.gmra.mxu0 %vm2937_vm7, %v4401_v26  ;;  %v5400_v26 = vld [vmem:[%s6638_s17 + $0xb0] sm:$0xff]  }
 0xb38   : > { %4940 = vmatpush3.bf16.msra.mxu0 %v5375_v27  ;;  %4955 = vmatprep.mubr.msk.bf16.mxu0 %vm5778_vm0, %v5777_v0  ;;  %v5401_v27 = vld [vmem:[%s6638_s17 + $0xa8] sm:$0xff]  }
 0xb39   : > { %4941 = vmatprep.subr.bf16.mxu0 %v5777_v0 }
 0xb3c   : > { %4942 = vmatpush3.bf16.msra.mxu0 %v5376_v28  ;;  %v5402_v28 = vld [vmem:[%s6638_s17 + $0xa0] sm:$0xff]  }
 0xb3d   : > { %4943 = vmatprep.subr.bf16.mxu0 %v5777_v0 }
 0xb40   : > { %4944 = vmatpush3.bf16.msra.mxu0 %v5377_v33  ;;  %v5403_v33 = vld [vmem:[%s6638_s17 + $0x98] sm:$0xff]  }
 0xb41   : > { %4945 = vmatprep.subr.bf16.mxu0 %v5777_v0 }
 0xb44   : > { %4946 = vmatpush3.bf16.msra.mxu0 %v5378_v29  ;;  %v5404_v29 = vld [vmem:[%s6638_s17 + $0x90] sm:$0xff]  }
 0xb45   : > { %4947 = vmatprep.subr.bf16.mxu0 %v5777_v0 }
 0xb48   : > { %4948 = vmatpush3.bf16.msra.mxu0 %v5379_v30  ;;  %v5405_v30 = vld [vmem:[%s6638_s17 + $0x88] sm:$0xff]  }
 0xb49   : > { %4949 = vmatprep.subr.bf16.mxu0 %v5777_v0 }
 0xb4c   : > { %4950 = vmatpush3.bf16.msra.mxu0 %v5380_v31  ;;  %v5406_v31 = vld [vmem:[%s6638_s17 + $0x80] sm:$0xff]  }
 0xb4d   : > { %4951 = vmatprep.subr.bf16.mxu0 %v5777_v0 }
 0xb50   : > { %4952 = vmatpush3.bf16.msra.mxu0 %v5381_v32  ;;  %v5407_v32 = vld [vmem:[%s6640_s19 + $0x38] sm:$0xff]  }
 0xb51   : > { %4953 = vmatprep.subr.bf16.mxu0 %v5777_v0 }
 0xb54   : > { %4954 = vmatpush3.bf16.msra.mxu0 %v5382_v34  ;;  %v5408_v34 = vld [vmem:[%s6640_s19 + $0x30] sm:$0xff]  }
 0xb55   : > { %4991 = vmatprep.subr.bf16.mxu0 %v5777_v0 }
 0xbe7   : > { %v3235_v35 = vpop.f32.mrf.mxu1 }
 0xbe9   : > { %v4931_v36 = vpop.f32.mrf.mxu1 }
 0xbea   : > { %v5410_v36 = vld [vmem:[%s6640_s19 + $0x20] sm:$0xff]  }
 0xbeb   : > { %v3238_v37 = vpop.f32.mrf.mxu1 }
 0xbec   : > { %v5411_v37 = vld [vmem:[%s6640_s19 + $0x18] sm:$0xff]  }
 0xbed   : > { %v4932_v38 = vpop.f32.mrf.mxu1 }
 0xbee   : > { %v5412_v38 = vld [vmem:[%s6640_s19 + $0x10] sm:$0xff]  }
 0xbef   : > { %v3147_v39 = vpop.f32.mrf.mxu0 }
 0xbf0   : > { %v3236_v40 = vadd.f32 %v3235_v35, %v3147_v39  ;;  %v5409_v35 = vld [vmem:[%s6640_s19 + $0x28] sm:$0xff]  }
 0xbf1   : > { %v4911_v41 = vpop.f32.mrf.mxu0 }
 0xbf3   : > { %v3150_v42 = vpop.f32.mrf.mxu0 }
 0xbf5   : > { %v4912_v43 = vpop.f32.mrf.mxu0 }
 0xbf7   : > { %v3280_v44 = vpop.f32.mrf.mxu0 }
 0xbf8   : > { %v3286_v45 = vpack.c.bf16 %v3280_v44, %v3280_v44 }
 0xbf9   : > { %v4937_v46 = vpop.f32.mrf.mxu0 }
 0xbfa   : > { %4956 = vmatmul.mubr.bf16.vlgmr.msra.gmra.mxu0 %v3286_v45 }
 0xbfb   : > { %v3283_v47 = vpop.f32.mrf.mxu0  ;;  %5007 = vmatprep.mubr.msk.bf16.mxu0 %vm5778_vm0, %v5777_v0  ;;  %4992 = vmatpush3.bf16.msra.mxu0 %v5383_v49 }
 0xbfc   : > { %4993 = vmatprep.subr.bf16.mxu0 %v5777_v0 }
 0xbfd   : > { %v4938_v48 = vpop.f32.mrf.mxu0 }
 0xbff   : > { %4994 = vmatpush3.bf16.msra.mxu0 %v5384_v50 }
 0xc00   : > { %4995 = vmatprep.subr.bf16.mxu0 %v5777_v0 }
 0xc03   : > { %4996 = vmatpush3.bf16.msra.mxu0 %v5386_v51 }
 0xc04   : > { %4997 = vmatprep.subr.bf16.mxu0 %v5777_v0 }
 0xc07   : > { %4998 = vmatpush3.bf16.msra.mxu0 %v5388_v52 }
 0xc08   : > { %4999 = vmatprep.subr.bf16.mxu0 %v5777_v0 }
 0xc0b   : > { %5000 = vmatpush3.bf16.msra.mxu0 %v5390_v53  ;;  %v5413_v53 = vld [vmem:[%s6640_s19 + $0x8] sm:$0xff]  }
 0xc0c   : > { %5001 = vmatprep.subr.bf16.mxu0 %v5777_v0 }
 0xc0f   : > { %5002 = vmatpush3.bf16.msra.mxu0 %v5392_v54  ;;  %v5414_v54 = vld [vmem:[%s6640_s19] sm:$0xff]  }
 0xc10   : > { %5003 = vmatprep.subr.bf16.mxu0 %v5777_v0 }
 0xc13   : > { %5004 = vmatpush3.bf16.msra.mxu0 %v5394_v55 }
 0xc14   : > { %5005 = vmatprep.subr.bf16.mxu0 %v5777_v0 }
 0xc17   : > { %5006 = vmatpush3.bf16.msra.mxu0 %v5396_v11 }
 0xc18   : > { %5037 = vmatprep.subr.bf16.mxu0 %v5777_v0 }
 0xcba   : > { %v3386_v56 = vpop.f32.mrf.mxu0 }
 0xcbb   : > { %v3392_v58 = vadd.f32 %v3386_v56, %v3236_v40  ;;  %v3860_v56 = vld [vmem:[%s6639_s18] sm:$0x1] }
 0xcbc   : > { %v4957_v59 = vpop.f32.mrf.mxu0 }
 0xcbd   : > { %v3400_v60 = vadd.f32 %v4411_v57, %v3392_v58 }
 0xcbe   : > { %v3389_v61 = vpop.f32.mrf.mxu0 }
 0xcbf   : > { %v3401_v62 = vmax.f32 %v3400_v60, 0.0 }
 0xcc0   : > { %v4958_v63 = vpop.f32.mrf.mxu0 }
 0xcc1   : > { %v3402_v1 = vpack.c.bf16 %v3401_v62, %v3401_v62 }
 0xcc3   : > { %v3410_v2 = vsel %vm3408_vm8, %v3402_v1, 0 }
 0xcc4   : > { %4960 = vmatpush3.bf16.msra.mxu1 %v3410_v2 }
 0xcc5   : > { %4965 = vmatprep.subr.bf16.mxu1 %v5777_v0 }
 0xcc7   : > { %4962 = vmatmul.mubr.msk.bf16.vlgmr.msra.gmra.mxu1 %vm3404_vm9, %v3403_v3 }
 0xcc8   : > { %4966 = vmatpush3.bf16.msra.mxu1 %v3410_v2  ;;  %4967 = vmatprep.mubr.msk.bf16.mxu1 %vm5778_vm0, %v5777_v0 }
 0xcc9   : > { %4971 = vmatprep.subr.bf16.mxu1 %v5777_v0 }
 0xccf   : > { %4968 = vmatmul.mubr.msk.bf16.vlgmr.msra.gmra.mxu1 %vm3404_vm9, %v4413_v4 }
 0xcd0   : > { %4972 = vmatpush3.bf16.msra.mxu1 %v5385_v5  ;;  %4987 = vmatprep.mubr.msk.bf16.mxu1 %vm5778_vm0, %v5777_v0 }
 0xcd1   : > { %4973 = vmatprep.subr.bf16.mxu1 %v5777_v0 }
 0xcd4   : > { %4974 = vmatpush3.bf16.msra.mxu1 %v5387_v6 }
 0xcd5   : > { %4975 = vmatprep.subr.bf16.mxu1 %v5777_v0 }
 0xcd8   : > { %4976 = vmatpush3.bf16.msra.mxu1 %v5389_v7 }
 0xcd9   : > { %4977 = vmatprep.subr.bf16.mxu1 %v5777_v0 }
 0xcdc   : > { %4978 = vmatpush3.bf16.msra.mxu1 %v5391_v8 }
 0xcdd   : > { %4979 = vmatprep.subr.bf16.mxu1 %v5777_v0 }
 0xce0   : > { %4980 = vmatpush3.bf16.msra.mxu1 %v5393_v9 }
 0xce1   : > { %4981 = vmatprep.subr.bf16.mxu1 %v5777_v0 }
 0xce4   : > { %4982 = vmatpush3.bf16.msra.mxu1 %v5395_v10 }
 0xce5   : > { %4983 = vmatprep.subr.bf16.mxu1 %v5777_v0 }
 0xce8   : > { %4984 = vmatpush3.bf16.msra.mxu1 %v5397_v12 }
 0xce9   : > { %4985 = vmatprep.subr.bf16.mxu1 %v5777_v0 }
 0xcec   : > { %4986 = vmatpush3.bf16.msra.mxu1 %v5398_v13 }
 0xced   : > { %5011 = vmatprep.subr.bf16.mxu1 %v5777_v0 }
 0xd87   : > { %v3446_v14 = vpop.f32.mrf.mxu1 }
 0xd88   : > { %v3452_v15 = vpack.c.bf16 %v3446_v14, %v3446_v14 }
 0xd89   : > { %v4963_v16 = vpop.f32.mrf.mxu1 }
 0xd8a   : > { %5008 = vmatmul.mubr.bf16.vlgmr.msra.gmra.mxu0 %v3452_v15 }
 0xd8b   : > { %v3449_v17 = vpop.f32.mrf.mxu1  ;;  %5053 = vmatprep.mubr.msk.bf16.mxu0 %vm5778_vm0, %v5777_v0  ;;  %5038 = vmatpush3.bf16.msra.mxu0 %v5407_v32 }
 0xd8c   : > { %5039 = vmatprep.subr.bf16.mxu0 %v5777_v0 }
 0xd8d   : > { %v4964_v18 = vpop.f32.mrf.mxu1 }
 0xd8f   : > { %v3508_v19 = vpop.f32.mrf.mxu1  ;;  %5040 = vmatpush3.bf16.msra.mxu0 %v5408_v34 }
 0xd90   : > { %v3514_v20 = vpack.c.bf16 %v3508_v19, %v3508_v19  ;;  %5041 = vmatprep.subr.bf16.mxu0 %v5777_v0 }
 0xd91   : > { %v4969_v21 = vpop.f32.mrf.mxu1 }
 0xd92   : > { %4988 = vmatmul.mubr.bf16.vlgmr.msra.gmra.mxu1 %v3514_v20 }
 0xd93   : > { %5012 = vmatpush3.bf16.msra.mxu1 %v3410_v2  ;;  %v3511_v22 = vpop.f32.mrf.mxu1  ;;  %5013 = vmatprep.mubr.msk.bf16.mxu1 %vm5778_vm0, %v5777_v0 }
 0xd94   : > { %5017 = vmatprep.subr.bf16.mxu1 %v5777_v0  ;;  %5042 = vmatpush3.bf16.msra.mxu0 %v5409_v35 }
 0xd95   : > { %v4970_v23 = vpop.f32.mrf.mxu1  ;;  %5043 = vmatprep.subr.bf16.mxu0 %v5777_v0 }
 0xd98   : > { %5044 = vmatpush3.bf16.msra.mxu0 %v5410_v36 }
 0xd99   : > { %5045 = vmatprep.subr.bf16.mxu0 %v5777_v0 }
 0xd9a   : > { %5014 = vmatmul.mubr.msk.bf16.vlgmr.msra.gmra.mxu1 %vm3404_vm9, %v4447_v24 }
 0xd9b   : > { %5018 = vmatpush3.bf16.msra.mxu1 %v5399_v25  ;;  %5033 = vmatprep.mubr.msk.bf16.mxu1 %vm5778_vm0, %v5777_v0 }
 0xd9c   : > { %5019 = vmatprep.subr.bf16.mxu1 %v5777_v0  ;;  %5046 = vmatpush3.bf16.msra.mxu0 %v5411_v37 }
 0xd9d   : > { %5047 = vmatprep.subr.bf16.mxu0 %v5777_v0 }
 0xd9f   : > { %5020 = vmatpush3.bf16.msra.mxu1 %v5400_v26 }
 0xda0   : > { %5021 = vmatprep.subr.bf16.mxu1 %v5777_v0  ;;  %5048 = vmatpush3.bf16.msra.mxu0 %v5412_v38 }
 0xda1   : > { %5049 = vmatprep.subr.bf16.mxu0 %v5777_v0 }
 0xda3   : > { %5022 = vmatpush3.bf16.msra.mxu1 %v5401_v27 }
 0xda4   : > { %5023 = vmatprep.subr.bf16.mxu1 %v5777_v0  ;;  %5050 = vmatpush3.bf16.msra.mxu0 %v5413_v53 }
 0xda5   : > { %5051 = vmatprep.subr.bf16.mxu0 %v5777_v0 }
 0xda7   : > { %5024 = vmatpush3.bf16.msra.mxu1 %v5402_v28 }
 0xda8   : > { %5025 = vmatprep.subr.bf16.mxu1 %v5777_v0  ;;  %5052 = vmatpush3.bf16.msra.mxu0 %v5414_v54 }
 0xdab   : > { %5026 = vmatpush3.bf16.msra.mxu1 %v5403_v33 }
 0xdac   : > { %5027 = vmatprep.subr.bf16.mxu1 %v5777_v0 }
 0xdaf   : > { %5028 = vmatpush3.bf16.msra.mxu1 %v5404_v29 }
 0xdb0   : > { %5029 = vmatprep.subr.bf16.mxu1 %v5777_v0 }
 0xdb3   : > { %5030 = vmatpush3.bf16.msra.mxu1 %v5405_v30 }
 0xdb4   : > { %5031 = vmatprep.subr.bf16.mxu1 %v5777_v0  ;;  %v3881_v0 = vld [vmem:[%s6699_s24] sm:$0x1] }
 0xdb7   : > { %5032 = vmatpush3.bf16.msra.mxu1 %v5406_v31 }
 0xe4a   : > { %v3702_v39 = vpop.f32.mrf.mxu0 }
 0xe4c   : > { %v5009_v40 = vpop.f32.mrf.mxu0 }
 0xe4e   : > { %v3705_v41 = vpop.f32.mrf.mxu0 }
 0xe50   : > { %v5010_v42 = vpop.f32.mrf.mxu0 }
 0xe52   : > { %v3614_v43 = vpop.f32.mrf.mxu1 }
 0xe53   : > { %v3703_v44 = vadd.f32 %v3702_v39, %v3614_v43 }
 0xe54   : > { %v4989_v45 = vpop.f32.mrf.mxu1 }
 0xe56   : > { %v3617_v46 = vpop.f32.mrf.mxu1 }
 0xe58   : > { %v4990_v47 = vpop.f32.mrf.mxu1 }
 0xe5a   : > { %v3747_v48 = vpop.f32.mrf.mxu1 }
 0xe5b   : > { %v3753_v49 = vpack.c.bf16 %v3747_v48, %v3747_v48 }
 0xe5c   : > { %v5015_v50 = vpop.f32.mrf.mxu1 }
 0xe5d   : > { %5034 = vmatmul.mubr.bf16.vlgmr.msra.gmra.mxu1 %v3753_v49 }
 0xe5e   : > { %v3750_v51 = vpop.f32.mrf.mxu1 }
 0xe60   : > { %v5016_v52 = vpop.f32.mrf.mxu1 }
 0xf1d   : > { %v3853_v55 = vpop.f32.mrf.mxu1 }
 0xf1e   : > { %v3859_v57 = vadd.f32 %v3853_v55, %v3703_v44 }
 0xf1f   : > { %v5035_v58 = vpop.f32.mrf.mxu1 }
 0xf20   : > { %v3861_v59 = vadd.f32 %v3860_v56, %v3859_v57 }
 0xf21   : > { %v3856_v60 = vpop.f32.mrf.mxu1 }
 0xf22   : > { %v3862_v61 = vmax.f32 %v3861_v59, 0.0 }
 0xf23   : > { %v5036_v62 = vpop.f32.mrf.mxu1 }
 0xf24   : > { %v3864_v63 = vpack.c.bf16 %v3862_v61, %v3862_v61 }
 0xf26   : > { %5054 = vmatmul.mubr.bf16.vlgmr.msra.gmra.mxu0 %v3864_v63 }
 0xfe6   : > { %v3964_v1 = vpop.f32.mrf.mxu0 }
 0xfe7   : > { %v3965_v2 = vadd.f32 %v3964_v1, %v3881_v0 }
 0xfe8   : > { %v5055_v3 = vpop.f32.mrf.mxu0 }
 0xfe9   : > { %3970 = vst [vmem:[%s788_s30] sm:$0x1] %v3965_v2 }
 0xfea   : > { %v3967_v4 = vpop.f32.mrf.mxu0 }
 0xfeb   : > { %5688 = shalt.err (!%p5685_p7)
}
 0xfec   : > { %s5689_s24 = scalar_lea.hbm %s6580_s27, 16  ;;  %s5693_s30 = scalar_lea.hbm %s6700_s1, 32 }
 0xfed   : > { %p5690_p11 = scmp.ne.s32.totalorder %s6580_s27, %s5689_s24  ;;  %p5694_p1 = scmp.lt.s32.totalorder %s6580_s27, %s6700_s1 }
 0xfee   : > { %p5695_p6 = scmp.lt.s32.totalorder %s5693_s30, %s5689_s24 }
 0xfef   : > { %p5691_p8 = pnand %p5690_p11, %p6701_p13 }
 0xff0   : > { %p5696_p9 = por %p5695_p6, %p5694_p1 }
 0xff1   : > { %p5692_p0 = pneg %p5691_p8 }
 0xff3   : > { %p5697_p3 = pnand %p5696_p9, %p5692_p0 }
 0xff5   : > { %5700 = shalt.err (!%p5697_p3)
}
 0xff6   : > { %5097 = dma.vmem_to_hbm [thread:$0]  (%p6701_p13), %s6582_s5, 16, %s6580_s27, %s3972_s0   ;;  %v5056_v5 = vpop.f32.mrf.mxu0 }
 0xff7 PF: > { %s6702_s29 = sld [smem:[#allocation29_spill]] }
 0xff8   : > { %s6703_s3 = sld [smem:[#allocation27_spill]] }
 0xff9   : > { %s6704_s21 = sld [smem:[#allocation33_spill]] }
 0xffd   : > { %p5154_p5 = scmp.ge.s32.totalorder %s6702_s29, 2 }
 0xffe   : > { %s3996_s22 = sand.u32 1, %s6703_s3  }
 0xfff   : > { %p6705_p10 = scmp.ne.s32.totalorder %s6704_s21, 0  ;;  %s3997_s2 = scalar_lea.sflag [#allocation4], %s3996_s22 }
0x1001   : > { %p5131_p2 = pnand %p5154_p5, %p6705_p10 }
0x1003   : > { %p5132_p4 = pneg %p5131_p2 }
0x1005   : > { %5742 = dma.done.wait (%p5132_p4), %s3997_s2, 16  }
0x1006   : > { %5744 = vsyncadd (%p5132_p4), %s3997_s2, 4294967280  ;;  %s6706_s27 = sld [smem:[#allocation30_spill]]  ;;  %s6709_s2 = smov %s5751_s25 }
0x1007   : > { %s6707_s24 = sld [smem:[#allocation28_spill]] }
0x1008   : > { %s6708_s26 = sld [smem:[#allocation31_spill]] }
0x100c   : > { %p37_p12 = scmp.ge.s32.totalorder %s6706_s27, 4  }
0x100d   : > { %s6710_s25 = smov %s6707_s24 }
0x100e   :  { %39 = sbr.rel (!%p37_p12) target bundleno = 18 (0x12), region = 204 }
0x1013   :  { %4001 = vsyncpa [#allocation3], 1 }
0x1014   :  { %4003 = vsyncpa [#allocation3 + $0x1], 1 }
0x1015   :  { %4004 = vsyncpa [#allocation6], 1 }
0x1016   :  { %4005 = vsyncpa [#allocation9], 1 }
0x1017   :  { %4006 = vsyncpa [#allocation12], 1 }
0x1018   :  { %4007 = vsyncpa [#allocation15], 1 }
0x1019   :  { %4008 = vsyncpa [#allocation18], 1 }
0x101a   :  { %4009 = vsyncpa [#allocation4], 1 }
0x101b   :  { %4011 = vsyncpa [#allocation4 + $0x1], 1 }

</bundles_post_ra>
